<compile_context>
chip_gen: v7x
topology: tpu7x:2x2x1
jax: 0.10.0
libtpu: 0.0.40
codegen_flags: <defaults>
</compile_context>

<pallas_src>
import functools

import jax
import jax.numpy as jnp
from jax.experimental import pallas as pl
from jax.experimental.pallas import tpu as pltpu


# ---------------------------------------------------------------------------
# constants / helpers
# ---------------------------------------------------------------------------
_C_PAD = 128                            # lane-padded channel width
_CONV_VMEM_LIMIT = 48 * 1024 * 1024     # per-generation safe (v7x has 64 MiB physical)
_MM_VMEM_LIMIT = 48 * 1024 * 1024


def _round_up(x, m):
    return ((x + m - 1) // m) * m


def _block_diag(a, b):
    ka, na = a.shape
    kb, nb = b.shape
    out = jnp.zeros((ka + kb, na + nb), a.dtype)
    out = out.at[:ka, :na].set(a)
    out = out.at[ka:, na:].set(b)
    return out


def _winit(key, shape, scale=0.05):
    return scale * jax.random.normal(key, shape, dtype=jnp.float32)


def _pick_row_tile(H, wp2, c_pad=_C_PAD, budget_bytes=2 * 1024 * 1024):
    """Largest th dividing H whose flat row count th*(W+2) is sublane aligned and fits a
    per-block VMEM budget; prefers >= 2 row tiles per image so megacore has a parallel axis."""
    max_rows = max(budget_bytes // (2 * c_pad), 4 * wp2)
    cands = [th for th in range(H, 0, -1)
             if H % th == 0
             and (th * wp2) % 8 == 0
             and th * wp2 >= 2 * wp2 + 2
             and (th * wp2 <= max_rows or th == H)]
    if not cands:
        return H
    for th in cands:                              # descending: biggest tile first
        if H // th >= 2 and (th * wp2) % 16 == 0:
            return th
    for th in cands:
        if H // th >= 2:
            return th
    return cands[0]


# ---------------------------------------------------------------------------
# Pallas kernel 1: 3x3 conv (stride 1, pad 1), row-tiled, halo via a second
# auto-pipelined BlockSpec, dx-grouped taps (3 MXU pushes of K=3*128), f32 VMEM
# accumulator, optional fused 1x1 head (used for the RPN loc||score head).
# ---------------------------------------------------------------------------
def _conv3x3_kernel(a_ref, b_ref, w_ref, bias_ref, mask_ref, *rest,
                    rows, wp2, relu, fused):
    if fused:
        hw_ref, hb_ref, o_ref, win_ref, slab_ref, acc_ref = rest
    else:
        o_ref, win_ref, slab_ref, acc_ref = rest

    C = a_ref.shape[-1]
    halo = 2 * wp2 + 2
    slab_rows = rows + 2 * wp2

    # Assemble the halo window: current row block + first `halo` rows of the next block.
    win_ref[0:rows, :] = a_ref[...]
    win_ref[rows:rows + halo, :] = b_ref[0:halo, :]

    # dx-im2col slab: slab[j, dx*C:(dx+1)*C] = win[j + dx]
    #   -> 3 MXU pushes with K = 3*C instead of 9 pushes with K = C.
    for dx in range(3):
        slab_ref[:, dx * C:(dx + 1) * C] = win_ref[dx:dx + slab_rows, :]

    acc_ref[...] = jnp.dot(slab_ref[0:rows, :], w_ref[0],
                           preferred_element_type=jnp.float32)
    for dy in (1, 2):
        acc_ref[...] += jnp.dot(slab_ref[dy * wp2:dy * wp2 + rows, :], w_ref[dy],
                                preferred_element_type=jnp.float32)

    out = acc_ref[...] + bias_ref[...]
    if relu:
        out = jnp.maximum(out, 0.0)
    # zero the 2 wrap-around columns of every spatial row so the output layout is clean
    # (required when the output is chained into the next conv).
    out = out * mask_ref[...]

    if fused:
        o_ref[...] = (jnp.dot(out.astype(jnp.bfloat16), hw_ref[...],
                              preferred_element_type=jnp.float32)
                      + hb_ref[...]).astype(o_ref.dtype)
    else:
        o_ref[...] = out.astype(o_ref.dtype)


def conv3x3_pallas(x_nhwc, w_g, b_row, *, relu=True, head_w=None, head_b=None,
                   from_conv=False):
    """3x3 / stride-1 / pad-1 conv (+ optional fused 1x1 head) on a 128-lane-padded map.

    x_nhwc:
      from_conv=False: (N, H, W, C_in) raw input (channels padded to 128 here).
      from_conv=True : (N, H, W+2, 128) output of a previous conv3x3_pallas call
                       (its 2 extra columns are already zero-masked).
    w_g: (3, 3*128, 128) dy-grouped taps (bf16);  b_row: (1, 128) f32.
    head_w/head_b: optional fused 1x1 head; if given only the head output is returned and
      the conv activation never leaves VMEM.
    Returns (N, H, W+2, n_out); columns W and W+1 are zero (masked in-kernel).
    """
    N, H, Win, C_in = x_nhwc.shape
    C = w_g.shape[1] // 3
    cout = w_g.shape[2]
    W = Win - 2 if from_conv else Win
    wp2 = W + 2
    th = _pick_row_tile(H, wp2)
    RT = H // th
    rows = th * wp2
    halo = 2 * wp2 + 2
    assert rows % 8 == 0 and rows >= halo, (th, wp2)

    total_rows = (RT + 1) * rows          # one extra zero block so the halo spec stays in range

    x = x_nhwc.astype(jnp.bfloat16)
    if from_conv:
        assert C_in == C
        flat = x.reshape(N, H * wp2, C)
        # shift by one padded row + col: [data,0,0] rows become [0,data,0] rows.
        xp_flat = jnp.pad(flat, ((0, 0), (wp2 + 1, total_rows - H * wp2 - wp2 - 1), (0, 0)))
    else:
        if C_in < C:
            x = jnp.pad(x, ((0, 0), (0, 0), (0, 0), (0, C - C_in)))
        # spatial zero pad (1 top, th-1 bottom, 1 left, 1 right) -> exactly RT+1 row blocks.
        xp = jnp.pad(x, ((0, 0), (1, th - 1), (1, 1), (0, 0)))
        xp_flat = xp.reshape(N, total_rows, C)

    # column mask: 1 for cols [0, W), 0 for the 2 wrap-around cols, repeated per row tile.
    col_mask = jnp.tile((jnp.arange(wp2) < W).astype(jnp.float32), th)[:, None]   # (rows, 1)

    fused = head_w is not None
    n_out = head_w.shape[1] if fused else cout
    out_dtype = jnp.float32 if fused else jnp.bfloat16

    in_specs = [
        pl.BlockSpec((None, rows, C), lambda b, r: (b, r, 0)),       # current row block
        pl.BlockSpec((None, rows, C), lambda b, r: (b, r + 1, 0)),   # halo source (next block)
        pl.BlockSpec((3, 3 * C, cout), lambda b, r: (0, 0, 0)),      # grouped taps
        pl.BlockSpec((1, cout), lambda b, r: (0, 0)),                # bias
        pl.BlockSpec((rows, 1), lambda b, r: (0, 0)),                # column mask
    ]
    inputs = [xp_flat, xp_flat, w_g, b_row, col_mask]
    if fused:
        in_specs += [pl.BlockSpec((cout, n_out), lambda b, r: (0, 0)),
                     pl.BlockSpec((1, n_out), lambda b, r: (0, 0))]
        inputs += [head_w, head_b]

    out = pl.pallas_call(
        functools.partial(_conv3x3_kernel, rows=rows, wp2=wp2, relu=relu, fused=fused),
        out_shape=jax.ShapeDtypeStruct((N, RT * rows, n_out), out_dtype),
        grid_spec=pltpu.PrefetchScalarGridSpec(
            num_scalar_prefetch=0,
            grid=(N, RT),
            in_specs=in_specs,
            out_specs=pl.BlockSpec((None, rows, n_out), lambda b, r: (b, r, 0)),
            scratch_shapes=[
                pltpu.VMEM((rows + halo, C), jnp.bfloat16),         # halo window
                pltpu.VMEM((rows + 2 * wp2, 3 * C), jnp.bfloat16),  # dx-im2col slab
                pltpu.VMEM((rows, cout), jnp.float32),              # f32 accumulator
            ],
        ),
        compiler_params=pltpu.CompilerParams(
            dimension_semantics=("parallel", "parallel"),
            vmem_limit_bytes=_CONV_VMEM_LIMIT,
        ),
    )(*inputs)
    return out.reshape(N, H, wp2, n_out)


# ---------------------------------------------------------------------------
# Pallas kernel 2: fused RoI-head stack  fc1 -> ReLU -> fc2 -> ReLU -> out
# (name + color heads fused via concatenated / block-diagonal weights).
# M (= #RoIs) is tiny, so everything lives in one grid step / VMEM.
# ---------------------------------------------------------------------------
def _roi_head_kernel(a_ref, w1_ref, b1_ref, w2_ref, b2_ref, w3_ref, b3_ref, o_ref):
    h1 = jnp.dot(a_ref[...], w1_ref[...], preferred_element_type=jnp.float32) + b1_ref[...]
    h1 = jnp.maximum(h1, 0.0).astype(jnp.bfloat16)
    h2 = jnp.dot(h1, w2_ref[...], preferred_element_type=jnp.float32) + b2_ref[...]
    h2 = jnp.maximum(h2, 0.0).astype(jnp.bfloat16)
    o_ref[...] = (jnp.dot(h2, w3_ref[...], preferred_element_type=jnp.float32)
                  + b3_ref[...]).astype(o_ref.dtype)


def roi_head_pallas(pooled, hp, n_out):
    M, K = pooled.shape
    Kp, N1 = hp["fc1_w"].shape
    _, N2 = hp["fc2_w"].shape
    _, N3 = hp["out_w"].shape
    Mp = _round_up(max(M, 8), 8)

    a = jnp.zeros((Mp, Kp), jnp.bfloat16).at[:M, :K].set(pooled.astype(jnp.bfloat16))

    out = pl.pallas_call(
        _roi_head_kernel,
        out_shape=jax.ShapeDtypeStruct((Mp, N3), jnp.float32),
        grid_spec=pltpu.PrefetchScalarGridSpec(
            num_scalar_prefetch=0,
            grid=(1,),
            in_specs=[
                pl.BlockSpec((Mp, Kp), lambda i: (0, 0)),
                pl.BlockSpec((Kp, N1), lambda i: (0, 0)),
                pl.BlockSpec((1, N1), lambda i: (0, 0)),
                pl.BlockSpec((N1, N2), lambda i: (0, 0)),
                pl.BlockSpec((1, N2), lambda i: (0, 0)),
                pl.BlockSpec((N2, N3), lambda i: (0, 0)),
                pl.BlockSpec((1, N3), lambda i: (0, 0)),
            ],
            out_specs=pl.BlockSpec((Mp, N3), lambda i: (0, 0)),
        ),
        compiler_params=pltpu.CompilerParams(
            dimension_semantics=("arbitrary",),
            vmem_limit_bytes=_MM_VMEM_LIMIT,
        ),
    )(a, hp["fc1_w"], hp["fc1_b"], hp["fc2_w"], hp["fc2_b"], hp["out_w"], hp["out_b"])
    return out[:M, :n_out]


# ---------------------------------------------------------------------------
# RPN glue: anchors, loc decode, proposal selection (top-K; NMS skipped)
# ---------------------------------------------------------------------------
def generate_anchors(H, W, feat_stride, anchor_sizes):
    ys = (jnp.arange(H, dtype=jnp.float32) + 0.5) * feat_stride
    xs = (jnp.arange(W, dtype=jnp.float32) + 0.5) * feat_stride
    cy, cx = jnp.meshgrid(ys, xs, indexing="ij")
    sizes = jnp.asarray(anchor_sizes, jnp.float32)
    half = sizes / 2.0
    ymin = cy[..., None] - half
    xmin = cx[..., None] - half
    ymax = cy[..., None] + half
    xmax = cx[..., None] + half
    anchors = jnp.stack([ymin, xmin, ymax, xmax], axis=-1)   # (H, W, A, 4)
    return anchors.reshape(-1, 4)


def loc2bbox(src_bbox, loc):
    src_h = src_bbox[..., 2] - src_bbox[..., 0]
    src_w = src_bbox[..., 3] - src_bbox[..., 1]
    src_cy = src_bbox[..., 0] + 0.5 * src_h
    src_cx = src_bbox[..., 1] + 0.5 * src_w
    dy, dx, dh, dw = loc[..., 0], loc[..., 1], loc[..., 2], loc[..., 3]
    cy = dy * src_h + src_cy
    cx = dx * src_w + src_cx
    h = jnp.exp(dh) * src_h
    w = jnp.exp(dw) * src_w
    return jnp.stack([cy - 0.5 * h, cx - 0.5 * w, cy + 0.5 * h, cx + 0.5 * w], axis=-1)


def rpn_proposals(rpn_locs, rpn_scores, anchors, img_size, n_proposals):
    N = rpn_locs.shape[0]
    H_img, W_img = img_size
    boxes = loc2bbox(anchors[None], rpn_locs)
    boxes = jnp.stack(
        [jnp.clip(boxes[..., 0], 0.0, float(H_img)),
         jnp.clip(boxes[..., 1], 0.0, float(W_img)),
         jnp.clip(boxes[..., 2], 0.0, float(H_img)),
         jnp.clip(boxes[..., 3], 0.0, float(W_img))], axis=-1)
    fg = jax.nn.softmax(rpn_scores, axis=-1)[..., 1]
    _, top_idx = jax.lax.top_k(fg, n_proposals)
    rois = jnp.take_along_axis(boxes, top_idx[..., None], axis=1)
    rois = rois.reshape(N * n_proposals, 4)
    roi_indices = jnp.repeat(jnp.arange(N, dtype=jnp.int32), n_proposals)
    return rois, roi_indices


# ---------------------------------------------------------------------------
# RoI sampling (plain-JAX gather; 1 nearest sample per bin)
# TODO(synk): at production RoI counts, move this gather into a scalar-prefetch
#             Pallas kernel so the fetch pipelines behind the fc1 matmul.
# ---------------------------------------------------------------------------
def roi_sample(feat_nhwc, rois, roi_indices, out_size, spatial_scale):
    N, H, W, C = feat_nhwc.shape
    ys, xs, ye, xe = rois[:, 0], rois[:, 1], rois[:, 2], rois[:, 3]
    ys, xs, ye, xe = (v * spatial_scale for v in (ys, xs, ye, xe))
    bin_h = (ye - ys) / out_size
    bin_w = (xe - xs) / out_size
    centers = jnp.arange(out_size, dtype=jnp.float32) + 0.5
    sample_y = ys[:, None] + centers[None, :] * bin_h[:, None]
    sample_x = xs[:, None] + centers[None, :] * bin_w[:, None]
    yidx = jnp.clip(jnp.floor(sample_y).astype(jnp.int32), 0, H - 1)
    xidx = jnp.clip(jnp.floor(sample_x).astype(jnp.int32), 0, W - 1)
    pooled = feat_nhwc[roi_indices[:, None, None], yidx[:, :, None], xidx[:, None, :], :]
    return pooled.reshape(rois.shape[0], -1)


# ---------------------------------------------------------------------------
# Parameter construction: channel lane-padding to 128, bf16 casting, head fusion
# all done ONCE here.
# ---------------------------------------------------------------------------
def _prep_linear(w, b):
    K, N = w.shape
    Kp = _round_up(K, 128)
    Np = _round_up(N, 128)
    w_p = jnp.zeros((Kp, Np), jnp.bfloat16).at[:K, :N].set(w.astype(jnp.bfloat16))
    b_p = jnp.zeros((1, Np), jnp.float32).at[0, :N].set(b.astype(jnp.float32))
    return w_p, b_p


def _prep_conv(key, cin, cout, c_pad=_C_PAD, scale=0.05):
    """Random 3x3 conv weights -> dy-grouped, channel-padded (3, 3*c_pad, c_pad) bf16."""
    w = scale * jax.random.normal(key, (3, 3, cin, cout), dtype=jnp.float32)
    w_g = jnp.zeros((3, 3 * c_pad, c_pad), jnp.bfloat16)
    for dy in range(3):
        for dx in range(3):
            w_g = w_g.at[dy, dx * c_pad:dx * c_pad + cin, :cout].set(
                w[dy, dx].astype(jnp.bfloat16))
    b = jnp.zeros((1, c_pad), jnp.float32)
    return w_g, b


def make_params(key, c_in, c_feat, n_anchor, roi_size, fc_dim, n_class_name, n_class_color):
    keys = jax.random.split(key, 12)
    params = {}

    # extractor / RPN 3x3 convs (channel-padded, dy-grouped taps)
    params["ext_w"], params["ext_b"] = _prep_conv(keys[0], c_in, c_feat)
    params["rpn_conv_w"], params["rpn_conv_b"] = _prep_conv(keys[1], c_feat, c_feat)

    # RPN 1x1 heads fused along N: [loc (4A) || score (2A)]; K padded to the 128
    # lane-padded feature channels (rows >= c_feat are zero, matching the zero-padded map).
    rpn_head_w = jnp.concatenate(
        [_winit(keys[2], (c_feat, n_anchor * 4)),
         _winit(keys[3], (c_feat, n_anchor * 2))], axis=1)
    rpn_head_b = jnp.zeros((n_anchor * 6,), jnp.float32)
    params["rpn_head_w"], params["rpn_head_b"] = _prep_linear(rpn_head_w, rpn_head_b)

    # fused (name + color) RoI-head stack
    pooled_dim = roi_size * roi_size * c_feat
    fc1_name = _winit(keys[4], (pooled_dim, fc_dim))
    fc1_color = _winit(keys[5], (pooled_dim, fc_dim))
    fc2_name = _winit(keys[6], (fc_dim, fc_dim))
    fc2_color = _winit(keys[7], (fc_dim, fc_dim))
    out_name = jnp.concatenate(
        [_winit(keys[8], (fc_dim, n_class_name * 4)),
         _winit(keys[9], (fc_dim, n_class_name))], axis=1)
    out_color = jnp.concatenate(
        [_winit(keys[10], (fc_dim, n_class_color * 4)),
         _winit(keys[11], (fc_dim, n_class_color))], axis=1)

    fc1_w = jnp.concatenate([fc1_name, fc1_color], axis=1)            # (pooled, 2F)
    fc2_w = _block_diag(fc2_name, fc2_color)                          # (2F, 2F)
    out_w = _block_diag(out_name, out_color)                          # (2F, 5*(Ln+Lc))
    fc1_b = jnp.zeros((2 * fc_dim,), jnp.float32)
    fc2_b = jnp.zeros((2 * fc_dim,), jnp.float32)
    out_b = jnp.zeros((5 * n_class_name + 5 * n_class_color,), jnp.float32)

    head = {}
    head["fc1_w"], head["fc1_b"] = _prep_linear(fc1_w, fc1_b)
    head["fc2_w"], head["fc2_b"] = _prep_linear(fc2_w, fc2_b)
    head["out_w"], head["out_b"] = _prep_linear(out_w, out_b)
    params["head"] = head
    return params


# ---------------------------------------------------------------------------
# FasterRCNN forward (mirrors FasterRCNN.forward of the PyTorch module)
# ---------------------------------------------------------------------------
def faster_rcnn_forward(params, x_nchw, scale=1.0, *, n_anchor=3,
                        anchor_sizes=(4.0, 8.0, 12.0), feat_stride=1,
                        n_proposals=8, roi_size=7, fc_dim=64,
                        n_class_name=5, n_class_color=4, c_feat=32):
    img_size = x_nchw.shape[2:]                       # (H, W) — like x.shape[2:]
    x = jnp.transpose(x_nchw, (0, 2, 3, 1))           # NCHW -> NHWC
    N, H, W, _ = x.shape

    # 1. Feature extraction (3x3 conv + ReLU); output stays 128-lane padded, column masked.
    h_pad = conv3x3_pallas(x, params["ext_w"], params["ext_b"], relu=True)   # (N,H,W+2,128)

    # 2. Region Proposal Network: 3x3 conv + ReLU with the fused loc||score 1x1 head
    #    (single kernel; the `mid` activation never leaves VMEM).
    rpn_raw = conv3x3_pallas(h_pad, params["rpn_conv_w"], params["rpn_conv_b"],
                             relu=True, head_w=params["rpn_head_w"],
                             head_b=params["rpn_head_b"], from_conv=True)
    rpn_val = rpn_raw[:, :, :W, :6 * n_anchor].reshape(N, H * W, 6 * n_anchor)
    rpn_locs = rpn_val[..., :4 * n_anchor].reshape(N, H * W * n_anchor, 4)
    rpn_scores = rpn_val[..., 4 * n_anchor:].reshape(N, H * W * n_anchor, 2)
    anchors = generate_anchors(H, W, feat_stride, anchor_sizes)
    rois, roi_indices = rpn_proposals(rpn_locs, rpn_scores, anchors, img_size, n_proposals)
    # `scale` would gate a min-size proposal filter.  TODO(synk): min-size filter.

    # 3. Localization / classification heads (name + color, one fused Pallas stack)
    h_feat = h_pad[:, :, :W, :c_feat]                 # drop lane/column padding for the gather
    pooled = roi_sample(h_feat, rois, roi_indices, roi_size, 1.0 / feat_stride)
    out = roi_head_pallas(pooled, params["head"],
                          n_out=5 * (n_class_name + n_class_color))

    s0 = 4 * n_class_name
    s1 = 5 * n_class_name
    s2 = s1 + 4 * n_class_color
    roi_name_locs = out[:, :s0]
    roi_name_scores = out[:, s0:s1]
    roi_color_locs = out[:, s1:s2]
    roi_color_scores = out[:, s2:]
    return (roi_name_locs, roi_name_scores, roi_color_locs, roi_color_scores,
            rois, roi_indices)


# ---------------------------------------------------------------------------
if __name__ == "__main__":
    key = jax.random.PRNGKey(0)
    k_param, k_x = jax.random.split(key)

    # Small, forward-consistent shapes: batch=2, channels=4, spatial=16x16.
    N, C_IN, H, W = 2, 4, 16, 16
    C_FEAT, N_ANCHOR, ROI_SIZE, FC_DIM = 32, 3, 7, 64
    N_CLASS_NAME, N_CLASS_COLOR = 5, 4
    N_PROPOSALS = 8

    params = make_params(k_param, C_IN, C_FEAT, N_ANCHOR, ROI_SIZE, FC_DIM,
                         N_CLASS_NAME, N_CLASS_COLOR)
    x = jax.random.normal(k_x, (N, C_IN, H, W), dtype=jnp.float32)   # NCHW, like PyTorch

    outs = faster_rcnn_forward(params, x, scale=1.0,
                               n_anchor=N_ANCHOR, n_proposals=N_PROPOSALS,
                               roi_size=ROI_SIZE, fc_dim=FC_DIM,
                               n_class_name=N_CLASS_NAME, n_class_color=N_CLASS_COLOR,
                               c_feat=C_FEAT)
    outs = jax.block_until_ready(outs)

    roi_name_locs, roi_name_scores, roi_color_locs, roi_color_scores, rois, roi_indices = outs
    R_total = N * N_PROPOSALS
    assert roi_name_locs.shape == (R_total, N_CLASS_NAME * 4)
    assert roi_name_scores.shape == (R_total, N_CLASS_NAME)
    assert roi_color_locs.shape == (R_total, N_CLASS_COLOR * 4)
    assert roi_color_scores.shape == (R_total, N_CLASS_COLOR)
    assert rois.shape == (R_total, 4)
    assert roi_indices.shape == (R_total,)
    print("KERNEL_OK")
</pallas_src>

<mosaic_0001>
module attributes {stable_mosaic.version = 11 : i64} {
  func.func @_conv3x3_kernel(%arg0: i32, %arg1: i32, %arg2: memref<1x144x128xbf16, #tpu.memory_space<vmem>>, %arg3: memref<1x144x128xbf16, #tpu.memory_space<vmem>>, %arg4: memref<3x384x128xbf16, #tpu.memory_space<vmem>>, %arg5: memref<1x128xf32, #tpu.memory_space<vmem>>, %arg6: memref<144x1xf32, #tpu.memory_space<vmem>>, %arg7: memref<1x144x128xbf16, #tpu.memory_space<vmem>>, %arg8: memref<182x128xbf16, #tpu.memory_space<vmem>>, %arg9: memref<180x384xbf16, #tpu.memory_space<vmem>>, %arg10: memref<144x128xf32, #tpu.memory_space<vmem>>) attributes {dimension_semantics = [#tpu.dimension_semantics<parallel>, #tpu.dimension_semantics<parallel>], iteration_bounds = array<i64: 2, 2>, scalar_prefetch = 0 : i64, scratch_operands = 3 : i64, tpu.core_type = #tpu.core_type<tc>, window_params = [{transform_indices = @transform_0, window_bounds = array<i64: 1, 144, 128>}, {transform_indices = @transform_1, window_bounds = array<i64: 1, 144, 128>}, {pipeline_mode = #tpu.pipeline_mode<synchronous>, transform_indices = @transform_2, window_bounds = array<i64: 3, 384, 128>}, {pipeline_mode = #tpu.pipeline_mode<synchronous>, transform_indices = @transform_3, window_bounds = array<i64: 1, 128>}, {pipeline_mode = #tpu.pipeline_mode<synchronous>, transform_indices = @transform_4, window_bounds = array<i64: 144, 1>}, {transform_indices = @transform_5, window_bounds = array<i64: 1, 144, 128>}]} {
    %c0 = arith.constant 0 : index
    %c0_0 = arith.constant 0 : index
    %c0_1 = arith.constant 0 : index
    %0 = vector.load %arg2[%c0, %c0_0, %c0_1] : memref<1x144x128xbf16, #tpu.memory_space<vmem>>, vector<1x144x128xbf16>
    %1 = vector.shape_cast %0 : vector<1x144x128xbf16> to vector<144x128xbf16>
    %c0_2 = arith.constant 0 : index
    %c0_3 = arith.constant 0 : index
    %2 = vector.load %arg8[%c0_2, %c0_3] : memref<182x128xbf16, #tpu.memory_space<vmem>>, vector<144x128xbf16>
    tpu.vector_store %arg8[%c0_2, %c0_3], %1 {strides = array<i32>} : memref<182x128xbf16, #tpu.memory_space<vmem>>, vector<144x128xbf16>,
    %c0_4 = arith.constant 0 : index
    %c0_5 = arith.constant 0 : index
    %c0_6 = arith.constant 0 : index
    %3 = vector.load %arg3[%c0_4, %c0_5, %c0_6] : memref<1x144x128xbf16, #tpu.memory_space<vmem>>, vector<1x38x128xbf16>
    %4 = vector.shape_cast %3 : vector<1x38x128xbf16> to vector<38x128xbf16>
    %c144 = arith.constant 144 : index
    %c0_7 = arith.constant 0 : index
    %5 = vector.load %arg8[%c144, %c0_7] : memref<182x128xbf16, #tpu.memory_space<vmem>>, vector<38x128xbf16>
    tpu.vector_store %arg8[%c144, %c0_7], %4 {strides = array<i32>} : memref<182x128xbf16, #tpu.memory_space<vmem>>, vector<38x128xbf16>,
    %c0_8 = arith.constant 0 : index
    %c0_9 = arith.constant 0 : index
    %6 = vector.load %arg8[%c0_8, %c0_9] : memref<182x128xbf16, #tpu.memory_space<vmem>>, vector<180x128xbf16>
    %c0_10 = arith.constant 0 : index
    %c0_11 = arith.constant 0 : index
    %7 = vector.load %arg9[%c0_10, %c0_11] : memref<180x384xbf16, #tpu.memory_space<vmem>>, vector<180x128xbf16>
    tpu.vector_store %arg9[%c0_10, %c0_11], %6 {strides = array<i32>} : memref<180x384xbf16, #tpu.memory_space<vmem>>, vector<180x128xbf16>,
    %c1 = arith.constant 1 : index
    %c0_12 = arith.constant 0 : index
    %8 = vector.load %arg8[%c1, %c0_12] : memref<182x128xbf16, #tpu.memory_space<vmem>>, vector<180x128xbf16>
    %c0_13 = arith.constant 0 : index
    %c128 = arith.constant 128 : index
    %9 = vector.load %arg9[%c0_13, %c128] : memref<180x384xbf16, #tpu.memory_space<vmem>>, vector<180x128xbf16>
    tpu.vector_store %arg9[%c0_13, %c128], %8 {strides = array<i32>} : memref<180x384xbf16, #tpu.memory_space<vmem>>, vector<180x128xbf16>,
    %c2 = arith.constant 2 : index
    %c0_14 = arith.constant 0 : index
    %10 = vector.load %arg8[%c2, %c0_14] : memref<182x128xbf16, #tpu.memory_space<vmem>>, vector<180x128xbf16>
    %c0_15 = arith.constant 0 : index
    %c256 = arith.constant 256 : index
    %11 = vector.load %arg9[%c0_15, %c256] : memref<180x384xbf16, #tpu.memory_space<vmem>>, vector<180x128xbf16>
    tpu.vector_store %arg9[%c0_15, %c256], %10 {strides = array<i32>} : memref<180x384xbf16, #tpu.memory_space<vmem>>, vector<180x128xbf16>,
    %c0_16 = arith.constant 0 : index
    %c0_17 = arith.constant 0 : index
    %12 = vector.load %arg9[%c0_16, %c0_17] : memref<180x384xbf16, #tpu.memory_space<vmem>>, vector<144x384xbf16>
    %c0_18 = arith.constant 0 : index
    %c0_19 = arith.constant 0 : index
    %c0_20 = arith.constant 0 : index
    %13 = vector.load %arg4[%c0_18, %c0_19, %c0_20] : memref<3x384x128xbf16, #tpu.memory_space<vmem>>, vector<1x384x128xbf16>
    %14 = vector.shape_cast %13 : vector<1x384x128xbf16> to vector<384x128xbf16>
    %cst = arith.constant dense<0.000000e+00> : vector<144x128xf32>
    %15 = tpu.matmul %12, %14, %cst {dimension_numbers = #tpu.dot_dimension_numbers<[1], [0], [0], [1], [0, 0, 1, 1], [], []>} : vector<144x384xbf16>, vector<384x128xbf16>, vector<144x128xf32> -> vector<144x128xf32>
    %c0_21 = arith.constant 0 : index
    %c0_22 = arith.constant 0 : index
    %16 = vector.load %arg10[%c0_21, %c0_22] : memref<144x128xf32, #tpu.memory_space<vmem>>, vector<144x128xf32>
    tpu.vector_store %arg10[%c0_21, %c0_22], %15 {strides = array<i32>} : memref<144x128xf32, #tpu.memory_space<vmem>>, vector<144x128xf32>,
    %c0_23 = arith.constant 0 : index
    %c0_24 = arith.constant 0 : index
    %17 = vector.load %arg10[%c0_23, %c0_24] : memref<144x128xf32, #tpu.memory_space<vmem>>, vector<144x128xf32>
    %c18 = arith.constant 18 : index
    %c0_25 = arith.constant 0 : index
    %18 = vector.load %arg9[%c18, %c0_25] : memref<180x384xbf16, #tpu.memory_space<vmem>>, vector<144x384xbf16>
    %c1_26 = arith.constant 1 : index
    %c0_27 = arith.constant 0 : index
    %c0_28 = arith.constant 0 : index
    %19 = vector.load %arg4[%c1_26, %c0_27, %c0_28] : memref<3x384x128xbf16, #tpu.memory_space<vmem>>, vector<1x384x128xbf16>
    %20 = vector.shape_cast %19 : vector<1x384x128xbf16> to vector<384x128xbf16>
    %cst_29 = arith.constant dense<0.000000e+00> : vector<144x128xf32>
    %21 = tpu.matmul %18, %20, %cst_29 {dimension_numbers = #tpu.dot_dimension_numbers<[1], [0], [0], [1], [0, 0, 1, 1], [], []>} : vector<144x384xbf16>, vector<384x128xbf16>, vector<144x128xf32> -> vector<144x128xf32>
    %22 = arith.addf %17, %21 : vector<144x128xf32>
    %c0_30 = arith.constant 0 : index
    %c0_31 = arith.constant 0 : index
    %23 = vector.load %arg10[%c0_30, %c0_31] : memref<144x128xf32, #tpu.memory_space<vmem>>, vector<144x128xf32>
    tpu.vector_store %arg10[%c0_30, %c0_31], %22 {strides = array<i32>} : memref<144x128xf32, #tpu.memory_space<vmem>>, vector<144x128xf32>,
    %c0_32 = arith.constant 0 : index
    %c0_33 = arith.constant 0 : index
    %24 = vector.load %arg10[%c0_32, %c0_33] : memref<144x128xf32, #tpu.memory_space<vmem>>, vector<144x128xf32>
    %c36 = arith.constant 36 : index
    %c0_34 = arith.constant 0 : index
    %25 = vector.load %arg9[%c36, %c0_34] : memref<180x384xbf16, #tpu.memory_space<vmem>>, vector<144x384xbf16>
    %c2_35 = arith.constant 2 : index
    %c0_36 = arith.constant 0 : index
    %c0_37 = arith.constant 0 : index
    %26 = vector.load %arg4[%c2_35, %c0_36, %c0_37] : memref<3x384x128xbf16, #tpu.memory_space<vmem>>, vector<1x384x128xbf16>
    %27 = vector.shape_cast %26 : vector<1x384x128xbf16> to vector<384x128xbf16>
    %cst_38 = arith.constant dense<0.000000e+00> : vector<144x128xf32>
    %28 = tpu.matmul %25, %27, %cst_38 {dimension_numbers = #tpu.dot_dimension_numbers<[1], [0], [0], [1], [0, 0, 1, 1], [], []>} : vector<144x384xbf16>, vector<384x128xbf16>, vector<144x128xf32> -> vector<144x128xf32>
    %29 = arith.addf %24, %28 : vector<144x128xf32>
    %c0_39 = arith.constant 0 : index
    %c0_40 = arith.constant 0 : index
    %30 = vector.load %arg10[%c0_39, %c0_40] : memref<144x128xf32, #tpu.memory_space<vmem>>, vector<144x128xf32>
    tpu.vector_store %arg10[%c0_39, %c0_40], %29 {strides = array<i32>} : memref<144x128xf32, #tpu.memory_space<vmem>>, vector<144x128xf32>,
    %c0_41 = arith.constant 0 : index
    %c0_42 = arith.constant 0 : index
    %31 = vector.load %arg10[%c0_41, %c0_42] : memref<144x128xf32, #tpu.memory_space<vmem>>, vector<144x128xf32>
    %c0_43 = arith.constant 0 : index
    %c0_44 = arith.constant 0 : index
    %32 = vector.load %arg5[%c0_43, %c0_44] : memref<1x128xf32, #tpu.memory_space<vmem>>, vector<1x128xf32>
    %33 = vector.broadcast %32 : vector<1x128xf32> to vector<144x128xf32>
    %34 = arith.addf %31, %33 : vector<144x128xf32>
    %cst_45 = arith.constant 0.000000e+00 : f32
    %35 = vector.broadcast %cst_45 : f32 to vector<144x128xf32>
    %36 = arith.maximumf %34, %35 : vector<144x128xf32>
    %c0_46 = arith.constant 0 : index
    %c0_47 = arith.constant 0 : index
    %37 = vector.load %arg6[%c0_46, %c0_47] : memref<144x1xf32, #tpu.memory_space<vmem>>, vector<144x1xf32>
    %38 = vector.broadcast %37 : vector<144x1xf32> to vector<144x128xf32>
    %39 = arith.mulf %36, %38 : vector<144x128xf32>
    %40 = arith.truncf %39 : vector<144x128xf32> to vector<144x128xbf16>
    %c0_48 = arith.constant 0 : index
    %c0_49 = arith.constant 0 : index
    %c0_50 = arith.constant 0 : index
    %41 = vector.load %arg7[%c0_48, %c0_49, %c0_50] : memref<1x144x128xbf16, #tpu.memory_space<vmem>>, vector<1x144x128xbf16>
    %42 = vector.shape_cast %41 : vector<1x144x128xbf16> to vector<144x128xbf16>
    %43 = vector.shape_cast %40 : vector<144x128xbf16> to vector<1x144x128xbf16>
    tpu.vector_store %arg7[%c0_48, %c0_49, %c0_50], %43 {strides = array<i32>} : memref<1x144x128xbf16, #tpu.memory_space<vmem>>, vector<1x144x128xbf16>,
    return
  }
  func.func @transform_0(%arg0: i32, %arg1: i32) -> (i32, i32, i32) {
    %c0_i32 = arith.constant 0 : i32
    %c0_i32_0 = arith.constant 0 : i32
    return %arg0, %arg1, %c0_i32 : i32, i32, i32
  }
  func.func @transform_1(%arg0: i32, %arg1: i32) -> (i32, i32, i32) {
    %c1_i32 = arith.constant 1 : i32
    %0 = arith.addi %arg1, %c1_i32 : i32
    %c0_i32 = arith.constant 0 : i32
    %c0_i32_0 = arith.constant 0 : i32
    return %arg0, %0, %c0_i32 : i32, i32, i32
  }
  func.func @transform_2(%arg0: i32, %arg1: i32) -> (i32, i32, i32) {
    %c0_i32 = arith.constant 0 : i32
    %c0_i32_0 = arith.constant 0 : i32
    %c0_i32_1 = arith.constant 0 : i32
    %c0_i32_2 = arith.constant 0 : i32
    return %c0_i32, %c0_i32_0, %c0_i32_1 : i32, i32, i32
  }
  func.func @transform_3(%arg0: i32, %arg1: i32) -> (i32, i32) {
    %c0_i32 = arith.constant 0 : i32
    %c0_i32_0 = arith.constant 0 : i32
    %c0_i32_1 = arith.constant 0 : i32
    return %c0_i32, %c0_i32_0 : i32, i32
  }
  func.func @transform_4(%arg0: i32, %arg1: i32) -> (i32, i32) {
    %c0_i32 = arith.constant 0 : i32
    %c0_i32_0 = arith.constant 0 : i32
    %c0_i32_1 = arith.constant 0 : i32
    return %c0_i32, %c0_i32_0 : i32, i32
  }
  func.func @transform_5(%arg0: i32, %arg1: i32) -> (i32, i32, i32) {
    %c0_i32 = arith.constant 0 : i32
    %c0_i32_0 = arith.constant 0 : i32
    return %arg0, %arg1, %c0_i32 : i32, i32, i32
  }
}

</mosaic_0001>

<bundles_post_ra>
// kernel: tpu_custom_call.1
= control target key start
LH: loop header
LB: loop body
LE: loop exit
PB: predicated region body
PF: predicated region fallthrough
CT: control target
= control target key end

     0   :  { %s5511_s0 = inlined_call_operand.hbm [shape: bf16[2,432,128], index: 0, kind: input, shape index: {}]   ;;  %s5512_s1 = inlined_call_operand.hbm [shape: bf16[2,432,128], index: 1, kind: input, shape index: {}]   ;;  %s5513_s2 = inlined_call_operand.hbm [shape: bf16[3,384,128], index: 2, kind: input, shape index: {}]   ;;  %s5514_s3 = inlined_call_operand.vmem [shape: f32[1,128], index: 3, kind: input, shape index: {}]   ;;  %s5515_s4 = inlined_call_operand.vmem [shape: f32[144,1], index: 4, kind: input, shape index: {}]   ;;  %s5516_s5 = inlined_call_operand.hbm [shape: bf16[2,288,128], index: 5, kind: output, shape index: {}]  }
   0x1   :  { %5534 = sst [smem:[#allocation22_spill]] %s5511_s0 }
   0x2   :  { %5535 = sst [smem:[#allocation23_spill]] %s5513_s2 }
   0x3   :  { %5536 = sst [smem:[#allocation24_spill]] %s5514_s3 }
   0x4   :  { %5537 = sst [smem:[#allocation25_spill]] %s5515_s4 }
   0x5   :  { %5538 = sst [smem:[#allocation26_spill]] %s5516_s5 }
   0x6   :  { %10 = vsyncpa [#allocation6], 0 }
   0x7   :  { %12 = vsyncpa [#allocation6 + $0x1], 0 }
   0x8   :  { %13 = vsyncpa [#allocation9], 0 }
   0x9   :  { %15 = vsyncpa [#allocation9 + $0x1], 0 }
   0xa   :  { %16 = vsyncpa [#allocation7], 0 }
   0xb   :  { %18 = vsyncpa [#allocation7 + $0x1], 0  ;;  %s4538_s18 = smov 0   ;;  %s4540_s19 = smov 0  }
   0xc   :  { %s4542_s20 = smov 0   ;;  %s4544_s21 = smov 0  }
   0xd   :  { %s4546_s22 = smov 0   ;;  %s4548_s23 = smov 0  }
   0xe   :  { %s4550_s24 = smov 0   ;;  %s4552_s25 = smov 0  }
   0xf   :  { %s4554_s26 = smov 0   ;;  %s4556_s27 = smov 0  }
  0x10   :  { %s4558_s28 = smov 0  }
  0x11 LB: > { %5539 = sst [smem:[#allocation16_spill]] %s4467_s21  ;;  %s4592_s29 = sadd.s32 4294967295, %s4495_s28   ;;  %s4495_s28 = sphi %s4558_s28, %s24_s28   ;;  %s4491_s27 = sphi %s4556_s27, %s5590_s27   ;;  %s4487_s26 = sphi %s4554_s26, %s5589_s26   ;;  %s4483_s25 = sphi %s4552_s25, %s5588_s25   ;;  %s4479_s24 = sphi %s4550_s24, %s5587_s24   ;;  %s4475_s23 = sphi %s4548_s23, %s5586_s23   ;;  %s4471_s22 = sphi %s4546_s22, %s5585_s22   ;;  %s4467_s21 = sphi %s4544_s21, %s5584_s21   ;;  %s4463_s20 = sphi %s4542_s20, %s5583_s20   ;;  %s4459_s19 = sphi %s4540_s19, %s5582_s19   ;;  %s4455_s18 = sphi %s4538_s18, %s5581_s18  }
  0x12   : > { %5540 = sst [smem:[#allocation17_spill]] %s4479_s24  ;;  %s3313_s30 = sadd.s32 4294967294, %s4495_s28  }
  0x13   : > { %5541 = sst [smem:[#allocation18_spill]] %s4483_s25  ;;  %p58_p0 = scmp.ne.s32.totalorder %s4471_s22, %s4467_s21 }
  0x14   : > { %p5517_p1 = scmp.eq.s32.totalorder %s4592_s29, 0  ;;  %p88_p2 = scmp.ne.s32.totalorder %s4459_s19, %s4455_s18 }
  0x15   : > { %p183_p4 = scmp.eq.s32.totalorder %s3313_s30, 3  ;;  %p3314_p6 = scmp.ge.s32.totalorder %s4495_s28, 1 }
  0x16   : > { %p4601_p3 = por %p5517_p1, %p58_p0  ;;  %p4607_p5 = por %p88_p2, %p5517_p1 }
  0x17   : > { %p4612_p7 = por %p183_p4, %p58_p0  ;;  %p190_p8 = scmp.lt.s32.totalorder %s4495_s28, 5 }
  0x18   : > { %s5542_s6 = scalar_select %p4601_p3, 1, 0 }
  0x19   : > { %s5543_s7 = scalar_select %p4607_p5, 1, 0 }
  0x1a   : > { %s5544_s8 = scalar_select %p4612_p7, 1, 0 }
  0x1b   : > { %p4617_p9 = pnand %p3314_p6, %p190_p8  ;;  %s4497_s10 = smov [#allocation10]  }
  0x1c   : > { %5545 = sst [smem:[#allocation19_spill]] %s5544_s8  ;;  %s202_s11 = sshll.u32 %s4497_s10, 4  ;;  %s203_s11 = int_to_ptr.vmem [resolvable:$true] %s202_s11 }
  0x1d   : > { %s5546_s9 = scalar_select %p4617_p9, 1, 0 }
  0x1e   : > { %p4007_p10 = pneg %p4617_p9  ;;  %s5548_s2 = sld [smem:[#allocation23_spill]] }
  0x20   : > { %p4625_p11 = pnand %p4007_p10, %p5517_p1 }
  0x22   : > { %p4278_p13 = pneg %p4625_p11 }
  0x24   : > { %s4276_s15 = scalar_lea.hbm %s5548_s2, 9216 }
  0x25   : > { %p4277_p12 = scmp.ne.s32.totalorder %s5548_s2, %s4276_s15  ;;  %p4283_p4 = scmp.lt.u32.totalorder %s4276_s15, %s5548_s2 }
  0x27   : > { %p4279_p0 = pnand %p4278_p13, %p4277_p12 }
  0x29   : > { %p4280_p2 = pneg %p4279_p0 }
  0x2b   : > { %p4285_p6 = pnand %p4283_p4, %p4280_p2 }
  0x2d   : > { %4288 = shalt.err (!%p4285_p6)
}
  0x2e   : > { %s4289_s10 = scalar_lea.vmem %s203_s11, 9216  ;;  %p4297_p7 = scmp.lt.s32.totalorder %s203_s11, %s203_s11 }
  0x2f   : > { %p4290_p8 = scmp.ne.s32.totalorder %s203_s11, %s4289_s10  ;;  %p4298_p5 = scmp.lt.s32.totalorder %s4289_s10, %s4289_s10 }
  0x31   : > { %p4292_p10 = pnand %p4290_p8, %p4278_p13  ;;  %p4299_p3 = por %p4298_p5, %p4297_p7 }
  0x33   : > { %p4293_p1 = pneg %p4292_p10 }
  0x35   : > { %p4300_p9 = pnand %p4299_p3, %p4293_p1 }
  0x37   : > { %4303 = shalt.err (!%p4300_p9)
}
  0x38   : > { %s5521_s13 = smov 64   ;;  %s5523_s14 = smov 4  }
  0x39   : > { %4010 = dma.hbm_to_vmem [thread:$0]  (!%p4625_p11), %s5548_s2, 9216, %s203_s11, [#allocation9], %s5521_s13, %s5521_s13, %s5523_s14  }
  0x3a   : > { %s33_s17 = sadd.s32 1, %s4487_s26  ;;  %s36_s18 = sadd.s32 1, %s4491_s27 }
  0x3b   : > { %p34_p1 = scmp.ge.s32.totalorder %s33_s17, 2  ;;  %p177_p3 = scmp.eq.s32.totalorder %s4592_s29, 3 }
  0x3c   : > { %p52_p5 = scmp.ne.s32.totalorder %s4475_s23, %s4471_s22  ;;  %s45_s12 = sadd.s32 1, %s4475_s23 }
  0x3d   : > { %s4653_s30 = scalar_select %p34_p1, 0, %s33_s17  }
  0x3e   : > { %s5592_s18 = smov (!%p34_p1, %s36_s18), %s4491_s27  ;;  %p5531_p7 = scmp.eq.s32.totalorder %s4495_s28, 0 }
  0x3f   : > { %5549 = sst [smem:[#allocation20_spill]] %s4653_s30  ;;  %p38_p9 = scmp.ge.s32.totalorder %s5592_s18, 2 }
  0x40   : > { %s69_s11 = sadd.s32 1, %s4653_s30  ;;  %s41_s10 = ssub.s32 %s4487_s26, %s4653_s30 }
  0x41   : > { %p4663_p11 = por %p5531_p7, %p52_p5  ;;  %s5594_s18 = smov (%p38_p9, %s5592_s18), 0 }
  0x42   : > { %5551 = sst [smem:[#allocation21_spill]] %s5594_s18  ;;  %s71_s16 = ssub.s32 %s33_s17, %s69_s11 }
  0x43   : > { %p4669_p12 = por %p177_p3, %p52_p5  ;;  %s40_s14 = ssub.s32 %s4491_s27, %s5594_s18 }
  0x44   : > { %s222_s2 = sand.u32 1, %s4475_s23   ;;  %s42_s8 = sor.u32 %s41_s10, %s40_s14 }
  0x45   : > { %s5552_s13 = scalar_select %p4669_p12, 1, 0 }
  0x46   : > { %p5530_p13 = scmp.lt.s32.totalorder %s4495_s28, 4  ;;  %p43_p0 = scmp.eq.s32.totalorder %s42_s8, 0 }
  0x47   : > { %s72_s30 = sor.u32 %s71_s16, %s40_s14  ;;  %s3991_s21 = smul.u32 72, %s222_s2 }
  0x48   : > { %s4678_s5 = scalar_select %p43_p0, %s4475_s23, %s45_s12  }
  0x49   : > { %s227_s25 = smul.u32 18, %s4487_s26  ;;  %s226_s3 = scalar_lea.vmem [#allocation5], %s3991_s21 }
  0x4a   : > { %s3992_s24 = smul.u32 54, %s4491_s27  ;;  %s235_s4 = sshll.u32 %s226_s3, 4  ;;  %s4682_s4 = int_to_ptr.vmem [resolvable:$true] %s235_s4 }
  0x4b   : > { %p4688_p2 = pnand %p5530_p13, %p4663_p11  ;;  %p4695_p4 = scmp.eq.s32.totalorder %s72_s30, 0 }
  0x4c   : > { %s4692_s11 = sadd.s32 %s3992_s24, %s227_s25  ;;  %s5555_s0 = sld [smem:[#allocation22_spill]] }
  0x4d   : > { %s3317_s8 = sshll.u32 %s4692_s11, 6  ;;  %s4706_s10 = scalar_lea.sflag [#allocation6], %s222_s2 }
  0x4e   : > { %p4306_p8 = pneg %p4688_p2 }
  0x52   : > { %s4704_s12 = scalar_lea.hbm %s5555_s0, %s3317_s8  ;;  %s4309_s15 = scalar_lea.hbm %s5555_s0, 6912 }
  0x53   : > { %s4304_s24 = scalar_lea.hbm %s4704_s12, 1152  ;;  %p4310_p3 = scmp.lt.u32.totalorder %s4704_s12, %s5555_s0 }
  0x54   : > { %p4305_p6 = scmp.ne.s32.totalorder %s4704_s12, %s4304_s24  ;;  %p4311_p5 = scmp.lt.u32.totalorder %s4309_s15, %s4304_s24 }
  0x55   : > { %p4313_p11 = scmp.lt.u32.totalorder %s4304_s24, %s4704_s12 }
  0x56   : > { %p4307_p10 = pnand %p4306_p8, %p4305_p6  ;;  %p4312_p9 = por %p4311_p5, %p4310_p3 }
  0x58   : > { %p4308_p1 = pneg %p4307_p10  ;;  %p4314_p0 = por %p4313_p11, %p4312_p9 }
  0x5a   : > { %p4315_p13 = pnand %p4314_p0, %p4308_p1 }
  0x5c   : > { %4318 = shalt.err (!%p4315_p13)
}
  0x5d   : > { %s4319_s2 = scalar_lea.vmem %s4682_s4, 1152  ;;  %s4500_s21 = smov [#allocation5]  }
  0x5e   : > { %p4320_p6 = scmp.ne.s32.totalorder %s4682_s4, %s4319_s2  ;;  %s4324_s25 = sshll.u32 %s4500_s21, 4  ;;  %s4325_s25 = int_to_ptr.vmem [resolvable:$false] %s4324_s25 }
  0x5f   : > { %s4326_s30 = scalar_lea.vmem %s4325_s25, 2304  ;;  %p4327_p12 = scmp.lt.s32.totalorder %s4682_s4, %s4325_s25 }
  0x60   : > { %p4322_p10 = pnand %p4320_p6, %p4306_p8  ;;  %p4328_p3 = scmp.lt.s32.totalorder %s4326_s30, %s4319_s2 }
  0x62   : > { %p4323_p7 = pneg %p4322_p10  ;;  %p4329_p5 = por %p4328_p3, %p4327_p12 }
  0x64   : > { %p4330_p9 = pnand %p4329_p5, %p4323_p7 }
  0x66   : > { %4333 = shalt.err (!%p4330_p9)
}
  0x67   : > { %s5556_s24 = smov 4   ;;  %s5557_s15 = smov 64  }
  0x68   : > { %4014 = dma.hbm_to_vmem [thread:$0]  (!%p4688_p2), %s4704_s12, 1152, %s4682_s4, %s4706_s10, %s5557_s15, %s5557_s15, %s5556_s24  }
  0x69   : > { %s3231_s3 = scalar_lea.hbm %s5512_s1, %s3317_s8  ;;  %s75_s2 = sadd.s32 1, %s4463_s20 }
  0x6a   : > { %p82_p7 = scmp.ne.s32.totalorder %s4463_s20, %s4459_s19  ;;  %p5558_p12 = scmp.eq.s32.totalorder %s4495_s28, 0 }
  0x6b   : > { %s4748_s21 = scalar_select %p4695_p4, %s4463_s20, %s75_s2  }
  0x6c   : > { %p84_p13 = por %p82_p7, %p5558_p12  ;;  %s245_s25 = sand.u32 1, %s4495_s28  }
  0x6d   : > { %s247_s30 = sand.u32 1, %s4463_s20   ;;  %p5559_p8 = scmp.lt.s32.totalorder %s4495_s28, 4 }
  0x6e   : > { %s3993_s0 = smul.u32 72, %s247_s30  ;;  %s4760_s4 = scalar_lea.hbm %s3231_s3, 1152 }
  0x6f   : > { %p4756_p1 = pnand %p5559_p8, %p84_p13  ;;  %s4764_s14 = scalar_lea.sflag [#allocation9], %s245_s25 }
  0x70   : > { %s249_s11 = scalar_lea.vmem [#allocation8], %s3993_s0  ;;  %s4364_s12 = scalar_lea.hbm %s3231_s3, 2304 }
  0x71   : > { %s259_s8 = sshll.u32 %s249_s11, 4  ;;  %p4335_p2 = scmp.ne.s32.totalorder %s4760_s4, %s4364_s12  ;;  %s4762_s8 = int_to_ptr.vmem [resolvable:$true] %s259_s8 }
  0x72   : > { %p4336_p4 = pneg %p4756_p1  ;;  %s4339_s17 = scalar_lea.hbm %s5512_s1, 6912 }
  0x73   : > { %p4340_p6 = scmp.lt.u32.totalorder %s4760_s4, %s5512_s1  ;;  %p4341_p10 = scmp.lt.u32.totalorder %s4339_s17, %s4364_s12 }
  0x74   : > { %p4337_p11 = pnand %p4336_p4, %p4335_p2  ;;  %p4343_p5 = scmp.lt.u32.totalorder %s4364_s12, %s4760_s4 }
  0x75   : > { %p4342_p3 = por %p4341_p10, %p4340_p6 }
  0x76   : > { %p4338_p0 = pneg %p4337_p11 }
  0x77   : > { %p4344_p9 = por %p4343_p5, %p4342_p3 }
  0x79   : > { %p4345_p7 = pnand %p4344_p9, %p4338_p0 }
  0x7b   : > { %4348 = shalt.err (!%p4345_p7)
}
  0x7c   : > { %s4349_s0 = scalar_lea.vmem %s4762_s8, 1152  ;;  %s4501_s3 = smov [#allocation8]  }
  0x7d   : > { %p4350_p12 = scmp.ne.s32.totalorder %s4762_s8, %s4349_s0  ;;  %s4354_s25 = sshll.u32 %s4501_s3, 4  ;;  %s4355_s25 = int_to_ptr.vmem [resolvable:$false] %s4354_s25 }
  0x7e   : > { %s4356_s11 = scalar_lea.vmem %s4355_s25, 2304  ;;  %p4357_p2 = scmp.lt.s32.totalorder %s4762_s8, %s4355_s25 }
  0x7f   : > { %p4352_p13 = pnand %p4350_p12, %p4336_p4  ;;  %p4358_p11 = scmp.lt.s32.totalorder %s4356_s11, %s4349_s0 }
  0x81   : > { %p4353_p8 = pneg %p4352_p13  ;;  %p4359_p6 = por %p4358_p11, %p4357_p2 }
  0x83   : > { %p4360_p10 = pnand %p4359_p6, %p4353_p8 }
  0x85   : > { %4363 = shalt.err (!%p4360_p10)
}
  0x86   : > { %4017 = dma.hbm_to_vmem [thread:$0]  (!%p4756_p1), %s4760_s4, 1152, %s4762_s8, %s4764_s14, %s5557_s15, %s5557_s15, %s5556_s24  }
  0x87   : > { %p5561_p4 = scmp.ne.s32.totalorder %s5546_s9, 0 }
  0x88   : > { %s4797_s12 = sand.u32 (!%p5561_p4), 1, %s4471_s22   ;;  %p5562_p0 = scmp.ne.s32.totalorder (!%p5561_p4), %s5542_s6, 0 }
  0x89   : > { %271 = sbr.rel (%p5561_p4) target bundleno = 645 (0x285), region = 40  ;;  %s274_s16 = scalar_lea.sflag (!%p5561_p4), [#allocation6], %s4797_s12 }
  0x8a   : > { %s3994_s10 = smul.u32 (!%p5561_p4), 72, %s4797_s12 }
  0x8c   : > { %s4803_s18 = scalar_lea.vmem (!%p5561_p4), [#allocation5], %s3994_s10 }
  0x90   : > { %4438 = dma.done.wait (%p5562_p0), %s274_s16, 1152  }
  0x91   : > { %4440 = vsyncadd (%p5562_p0), %s274_s16, 4294966144  ;;  %s282_s9 = sand.u32 1, %s4592_s29   ;;  %s284_s24 = sand.u32 1, %s4459_s19  }
  0x92   : > { %s3995_s15 = smul.u32 72, %s284_s24  ;;  %s283_s4 = scalar_lea.sflag [#allocation9], %s282_s9 }
  0x93   : > { %p5563_p1 = scmp.ne.s32.totalorder %s5543_s7, 0 }
  0x94   : > { %s4811_s8 = scalar_lea.vmem [#allocation8], %s3995_s15 }
  0x95   : > { %4442 = dma.done.wait (%p5563_p1), %s283_s4, 1152  }
  0x96   : > { %4444 = vsyncadd (%p5563_p1), %s283_s4, 4294966144  ;;  %p5564_p3 = scmp.eq.s32.totalorder %s4592_s29, 0 }
  0x98   : > { %4446 = dma.done.wait (%p5564_p3), [#allocation9], 9216   ;;  %p5565_p5 = pmov %p5564_p3 }
  0x99   : > { %v4502_v0 = vmov 0.0   ;;  %vm4503_vm0 = vmmov 0   ;;  %v4124_v1 = vld [vmem:[#allocation10 + $0x40] sm:$0xff]   ;;  %v4127_v4 = vld [vmem:[#allocation10 + $0x48] sm:$0xff]   ;;  %v4130_v7 = vld [vmem:[#allocation10 + $0x50] sm:$0xff]   ;;  %vm766_vm3 = vcmask 1042432  }
  0x9a   : > { %4448 = vsyncadd (%p5565_p5), [#allocation9], 4294958080  ;;  %3835 = vmatprep.subr.bf16.mxu1 %v4502_v0  ;;  %3851 = vmatprep.mubr.msk.bf16.mxu1 %vm4503_vm0, %v4502_v0  ;;  %v4125_v2 = vld [vmem:[#allocation10] sm:$0xff]   ;;  %v4128_v5 = vld [vmem:[#allocation10 + $0x8] sm:$0xff]   ;;  %vm442_vm1 = vsmask.f32 3328 }
  0x9b   : > { %3574 = vmatprep.subr.bf16.mxu0 %v4124_v1  ;;  %v4126_v3 = vld [vmem:[#allocation10 + $0x80] sm:$0xff]   ;;  %v4129_v6 = vld [vmem:[#allocation10 + $0x88] sm:$0xff]   ;;  %v4131_v8 = vld [vmem:[#allocation10 + $0x10] sm:$0xff]   ;;  %vm443_vm2 = vsmask.f32 7440  ;;  %vm767_vm4 = vcmask 1046532  }
  0x9c   : > { %3575 = vmatpush3.bf16.msra.mxu0 %v4125_v2  ;;  %3836 = vmatpush3.bf16.msra.mxu1 %v4126_v3  ;;  %v4132_v9 = vld [vmem:[#allocation10 + $0x90] sm:$0xff]   ;;  %v4133_v10 = vld [vmem:[#allocation10 + $0x58] sm:$0xff]   ;;  %v4136_v13 = vld [vmem:[#allocation10 + $0x60] sm:$0xff]   ;;  %vm1713_vm7 = vcmask 1046528   ;;  %vm2418_vm8 = vcmask 1045504   ;;  %s5570_s7 = sld [smem:[#allocation25_spill]] }
  0x9d   : > { %3576 = vmatprep.subr.bf16.mxu0 %v4127_v4  ;;  %3837 = vmatprep.subr.bf16.mxu1 %v4502_v0  ;;  %v4134_v11 = vld [vmem:[#allocation10 + $0x18] sm:$0xff]   ;;  %v4137_v14 = vld [vmem:[#allocation10 + $0x20] sm:$0xff]   ;;  %v4139_v16 = vld [vmem:[#allocation10 + $0x68] sm:$0xff]   ;;  %s5571_s2 = sld [smem:[#allocation24_spill]]  ;;  %s5400_s30 = scalar_lea.vmem [#allocation11], %s3994_s10 }
  0x9e   : > { %v4135_v12 = vld [vmem:[#allocation10 + $0x98] sm:$0xff]   ;;  %v4138_v15 = vld [vmem:[#allocation10 + $0xa0] sm:$0xff]   ;;  %v4140_v17 = vld [vmem:[#allocation10 + $0x28] sm:$0xff]   ;;  %s5572_s10 = sld [smem:[#allocation17_spill]]  ;;  %s5573_s0 = sld [smem:[#allocation18_spill]] }
  0x9f   : > { %v4141_v18 = vld [vmem:[#allocation10 + $0xa8] sm:$0xff]   ;;  %v4142_v19 = vld [vmem:[#allocation10 + $0x70] sm:$0xff]   ;;  %v4145_v22 = vld [vmem:[#allocation10 + $0x78] sm:$0xff]   ;;  %s5574_s15 = sld [smem:[#allocation26_spill]]  ;;  %p5575_p7 = scmp.ne.s32.totalorder %s5552_s13, 0 }
  0xa0   : > { %3577 = vmatpush3.bf16.msra.mxu0 %v4128_v5  ;;  %3838 = vmatpush3.bf16.msra.mxu1 %v4129_v6  ;;  %v4143_v20 = vld [vmem:[#allocation10 + $0x30] sm:$0xff]   ;;  %v327_v23 = vld [vmem:[%s4803_s18] sm:$0xff]   ;;  %v4146_v25 = vld [vmem:[#allocation10 + $0x38] sm:$0xff]   ;;  %s4505_s6 = smov [#allocation11]  }
  0xa1   : > { %3578 = vmatprep.subr.bf16.mxu0 %v4130_v7  ;;  %3839 = vmatprep.subr.bf16.mxu1 %v4502_v0  ;;  %v4144_v21 = vld [vmem:[#allocation10 + $0xb0] sm:$0xff]   ;;  %345 = vst [vmem:[#allocation2] sm:$0xff] %v327_v23   ;;  %v4147_v26 = vld [vmem:[#allocation10 + $0xb8] sm:$0xff]   ;;  %v4151_v28 = vld [vmem:[#allocation10 + $0x100] sm:$0xff]   ;;  %s4369_s14 = sshll.u32 %s4505_s6, 4  ;;  %s4370_s14 = int_to_ptr.vmem [resolvable:$false] %s4369_s14 }
  0xa2   : > { %v329_v24 = vld [vmem:[%s4803_s18 + $0x8] sm:$0xff]   ;;  %v331_v27 = vld [vmem:[%s4803_s18 + $0x10] sm:$0xff]   ;;  %v333_v29 = vld [vmem:[%s4803_s18 + $0x18] sm:$0xff]   ;;  %s4371_s17 = scalar_lea.vmem %s4370_s14, 2304 }
  0xa3   : > { %347 = vst [vmem:[#allocation2 + $0x8] sm:$0xff] %v329_v24   ;;  %349 = vst [vmem:[#allocation2 + $0x10] sm:$0xff] %v331_v27   ;;  %v2962_v52 = vld [vmem:[%s5570_s7 + $0x40] sm:$0xff] }
  0xa4   : > { %3579 = vmatpush3.bf16.msra.mxu0 %v4131_v8  ;;  %3840 = vmatpush3.bf16.msra.mxu1 %v4132_v9  ;;  %351 = vst [vmem:[#allocation2 + $0x18] sm:$0xff] %v333_v29   ;;  %vm4838_vm5 = vmor %vm766_vm3, %vm767_vm4  ;;  %s3178_s3 = smul.u32 18, %s5572_s10 }
  0xa5   : > { %3580 = vmatprep.subr.bf16.mxu0 %v4133_v10  ;;  %3841 = vmatprep.subr.bf16.mxu1 %v4502_v0  ;;  %vm4844_vm6 = vmor %vm442_vm1, %vm443_vm2  ;;  %s3996_s25 = smul.u32 36, %s5573_s0 }
  0xa7   : > { %s3183_s11 = sadd.s32 %s3996_s25, %s3178_s3 }
  0xa8   : > { %3581 = vmatpush3.bf16.msra.mxu0 %v4134_v11  ;;  %3842 = vmatpush3.bf16.msra.mxu1 %v4135_v12  ;;  %v373_v30 = vld [vmem:[#allocation2] sm:$0xf]  ;;  %v374_v31 = vld [vmem:[#allocation2 + $0x4] sm:$0xf]  ;;  %s3500_s16 = sshll.u32 %s3183_s11, 6 }
  0xa9   : > { %3582 = vmatprep.subr.bf16.mxu0 %v4136_v13  ;;  %3843 = vmatprep.subr.bf16.mxu1 %v4502_v0  ;;  %v419_v32 = vld [vmem:[#allocation2] sm:$0xf]  ;;  %396 = vst [vmem:[#allocation3] sm:$0xf] %v373_v30  ;;  %397 = vst [vmem:[#allocation3 + $0xc] sm:$0xf] %v374_v31  ;;  %s5445_s4 = scalar_lea.hbm %s5574_s15, %s3500_s16 }
  0xaa   : > { %v420_v33 = vld [vmem:[#allocation2 + $0x4] sm:$0xf]  ;;  %v421_v34 = vld [vmem:[#allocation2 + $0x8] sm:$0xf]  ;;  %v446_v35 = vshrl.u32 %v419_v32, 16  ;;  %v449_v36 = vshll.u32 %v419_v32, 16 }
  0xab   : > { %v455_v37 = vshll.u32 %v420_v33, 16  ;;  %v459_v38 = vshrl.u32 %v420_v33, 16  ;;  %v465_v39 = vshll.u32 %v421_v34, 16  ;;  %v469_v40 = vshrl.u32 %v421_v34, 16  ;;  %v720_v41 = vld [vmem:[#allocation2] sm:$0xe] }
  0xac   : > { %3583 = vmatpush3.bf16.msra.mxu0 %v4137_v14  ;;  %3844 = vmatpush3.bf16.msra.mxu1 %v4138_v15  ;;  %v448_v42 = vrot.slane %v446_v35, 4  ;;  %v451_v43 = vrot.slane %v449_v36, 5  ;;  %v721_v44 = vld [vmem:[#allocation2 + $0x4] sm:$0xf]  ;;  %v722_v45 = vld [vmem:[#allocation2 + $0x8] sm:$0xf] }
  0xad   : > { %3584 = vmatprep.subr.bf16.mxu0 %v4139_v16  ;;  %3845 = vmatprep.subr.bf16.mxu1 %v4502_v0  ;;  %v457_v46 = vrot.slane %v455_v37, 5  ;;  %v461_v47 = vrot.slane %v459_v38, 4  ;;  %v467_v48 = vrot.slane %v465_v39, 5  ;;  %v471_v49 = vrot.slane %v469_v40, 4  ;;  %v375_v51 = vld [vmem:[#allocation2 + $0x8] sm:$0xf] }
  0xae   : > { %v452_v53 = vor.u32 %v451_v43, %v448_v42  ;;  %v3321_v54 = vrot.slane %v720_v41, 9  ;;  %v771_v55 = vrot.slane %v721_v44, 5  ;;  %v774_v56 = vrot.slane %v722_v45, 5  ;;  %v376_v57 = vld [vmem:[#allocation2 + $0xc] sm:$0xf]  ;;  %v4154_v40 = vld [vmem:[#allocation10 + $0x140] sm:$0xff]  }
  0xaf   : > { %398 = vst [vmem:[#allocation3 + $0x18] sm:$0xf] %v375_v51  ;;  %v462_v58 = vor.u32 %v461_v47, %v457_v46  ;;  %v472_v59 = vor.u32 %v471_v49, %v467_v48  ;;  %399 = vst [vmem:[#allocation3 + $0x24] sm:$0xf] %v376_v57  ;;  %v422_v60 = vld [vmem:[#allocation2 + $0xc] sm:$0xf] }
  0xb0   : > { %3585 = vmatpush3.bf16.msra.mxu0 %v4140_v17  ;;  %3846 = vmatpush3.bf16.msra.mxu1 %v4141_v18  ;;  %v423_v61 = vld [vmem:[#allocation2 + $0x10] sm:$0xf]  ;;  %v723_v62 = vld [vmem:[#allocation2 + $0xc] sm:$0xf]  ;;  %v453_v63 = vrot.slane %v452_v53, 4  ;;  %v772_v1 = vsel %vm4838_vm5, %v3321_v54, %v771_v55  ;;  %v773_v2 = vrot.slane %v771_v55, 4 }
  0xb1   : > { %3586 = vmatprep.subr.bf16.mxu0 %v4142_v19  ;;  %3847 = vmatprep.subr.bf16.mxu1 %v4502_v0  ;;  %v475_v3 = vshll.u32 %v422_v60, 16  ;;  %v724_v4 = vld [vmem:[#allocation2 + $0x10] sm:$0xf]  ;;  %v463_v5 = vrot.slane %v462_v58, 4  ;;  %v473_v6 = vrot.slane %v472_v59, 4  ;;  %v479_v7 = vshrl.u32 %v422_v60, 16 }
  0xb2   : > { %860 = vst [vmem:[#allocation3 + $0x8] sm:$0xf] %v772_v1  ;;  %v485_v8 = vshll.u32 %v423_v61, 16  ;;  %v377_v9 = vld [vmem:[#allocation2 + $0x10] sm:$0xf]  ;;  %v458_v10 = vsel %vm4844_vm6, %v453_v63, %v457_v46  ;;  %v775_v11 = vsel %vm4838_vm5, %v773_v2, %v774_v56  ;;  %v489_v13 = vshrl.u32 %v423_v61, 16 }
  0xb3   : > { %v477_v12 = vrot.slane %v475_v3, 5  ;;  %v378_v14 = vld [vmem:[#allocation2 + $0x14] sm:$0xf]  ;;  %400 = vst [vmem:[#allocation3 + $0x30] sm:$0xf] %v377_v9  ;;  %v468_v16 = vsel %vm4844_vm6, %v463_v5, %v467_v48  ;;  %v481_v17 = vrot.slane %v479_v7, 4 }
  0xb4   : > { %3587 = vmatpush3.bf16.msra.mxu0 %v4143_v20  ;;  %3848 = vmatpush3.bf16.msra.mxu1 %v4144_v21  ;;  %v424_v15 = vld [vmem:[#allocation2 + $0x14] sm:$0xf]  ;;  %697 = vst [vmem:[#allocation3 + $0x4] sm:$0xf] %v458_v10  ;;  %861 = vst [vmem:[#allocation3 + $0x14] sm:$0xf] %v775_v11 }
  0xb5   : > { %3588 = vmatprep.subr.bf16.mxu0 %v4145_v22  ;;  %3849 = vmatprep.subr.bf16.mxu1 %v4502_v0  ;;  %v487_v18 = vrot.slane %v485_v8, 5  ;;  %v776_v19 = vrot.slane %v774_v56, 4  ;;  %401 = vst [vmem:[#allocation3 + $0x3c] sm:$0xf] %v378_v14  ;;  %v425_v20 = vld [vmem:[#allocation2 + $0x18] sm:$0xf]  ;;  %v478_v21 = vsel %vm4844_vm6, %v473_v6, %v477_v12  ;;  %v482_v27 = vor.u32 %v481_v17, %v477_v12 }
  0xb6   : > { %698 = vst [vmem:[#allocation3 + $0x10] sm:$0xf] %v468_v16  ;;  %v777_v22 = vrot.slane %v723_v62, 5  ;;  %v780_v23 = vrot.slane %v724_v4, 5  ;;  %v491_v24 = vrot.slane %v489_v13, 4  ;;  %v499_v29 = vshrl.u32 %v424_v15, 16 }
  0xb7   : > { %699 = vst [vmem:[#allocation3 + $0x1c] sm:$0xf] %v478_v21  ;;  %v505_v30 = vshll.u32 %v425_v20, 16  ;;  %v726_v31 = vld [vmem:[#allocation2 + $0x18] sm:$0xf]  ;;  %v509_v35 = vshrl.u32 %v425_v20, 16 }
  0xb8   : > { %3589 = vmatpush3.bf16.msra.mxu0 %v4146_v25  ;;  %3850 = vmatpush3.bf16.msra.mxu1 %v4147_v26  ;;  %v725_v25 = vld [vmem:[#allocation2 + $0x14] sm:$0xf]  ;;  %v778_v32 = vsel %vm4838_vm5, %v776_v19, %v777_v22  ;;  %v779_v33 = vrot.slane %v777_v22, 4  ;;  %v492_v34 = vor.u32 %v491_v24, %v487_v18  ;;  %v483_v36 = vrot.slane %v482_v27, 4  ;;  %v379_v49 = vld [vmem:[#allocation2 + $0x18] sm:$0xf] }
  0xb9   : > { %3661 = vmatprep.subr.bf16.mxu0 %v4151_v28  ;;  %3887 = vmatprep.subr.bf16.mxu1 %v4502_v0  ;;  %v335_v26 = vld [vmem:[%s4803_s18 + $0x20] sm:$0xff]   ;;  %v495_v28 = vshll.u32 %v424_v15, 16  ;;  %862 = vst [vmem:[#allocation3 + $0x20] sm:$0xf] %v778_v32  ;;  %v501_v38 = vrot.slane %v499_v29, 4  ;;  %v507_v39 = vrot.slane %v505_v30, 5 }
  0xba   : > { %353 = vst [vmem:[#allocation2 + $0x20] sm:$0xff] %v335_v26   ;;  %v781_v41 = vsel %vm4838_vm5, %v779_v33, %v780_v23  ;;  %v493_v42 = vrot.slane %v492_v34, 4  ;;  %v782_v43 = vrot.slane %v780_v23, 4  ;;  %v783_v44 = vrot.slane %v725_v25, 5  ;;  %v4153_v45 = vld [vmem:[#allocation10 + $0xc0] sm:$0xff]   ;;  %v4158_v54 = vld [vmem:[#allocation10 + $0x108] sm:$0xff]  }
  0xbb   : > { %v497_v37 = vrot.slane %v495_v28, 5  ;;  %v488_v46 = vsel %vm4844_vm6, %v483_v36, %v487_v18  ;;  %863 = vst [vmem:[#allocation3 + $0x2c] sm:$0xf] %v781_v41  ;;  %v786_v48 = vrot.slane %v726_v31, 5  ;;  %v511_v51 = vrot.slane %v509_v35, 4  ;;  %v4160_v62 = vld [vmem:[#allocation10 + $0x148] sm:$0xff]  }
  0xbc   : > { %v4152_v53 = vld [vmem:[#allocation3 + $0x8] ss:$12 sps:$4 sm:$0xff]   ;;  %700 = vst [vmem:[#allocation3 + $0x28] sm:$0xf] %v488_v46  ;;  %v784_v56 = vsel %vm4838_vm5, %v782_v43, %v783_v44  ;;  %v785_v57 = vrot.slane %v783_v44, 4  ;;  %v4159_v4 = vld [vmem:[#allocation10 + $0xc8] sm:$0xff]  }
  0xbd   : > { %v502_v47 = vor.u32 %v501_v38, %v497_v37  ;;  %v498_v55 = vsel %vm4844_vm6, %v493_v42, %v497_v37  ;;  %402 = vst [vmem:[#allocation3 + $0x48] sm:$0xf] %v379_v49  ;;  %v4148_v58 = vld [vmem:[#allocation3] ss:$12 sps:$4 sm:$0xff]   ;;  %v4150_v59 = vld [vmem:[#allocation3 + $0x4] ss:$12 sps:$4 sm:$0xff]   ;;  %v512_v61 = vor.u32 %v511_v51, %v507_v39  ;;  %3852 = vmatmul.mubr.bf16.vlgmr.msra.gmra.mrb[0].mxu1 %v4152_v53 }
  0xbe   : > { %701 = vst [vmem:[#allocation3 + $0x34] sm:$0xf] %v498_v55  ;;  %864 = vst [vmem:[#allocation3 + $0x38] sm:$0xf] %v784_v56  ;;  %v787_v63 = vsel %vm4838_vm5, %v785_v57, %v786_v48  ;;  %v380_v1 = vld [vmem:[#allocation2 + $0x1c] sm:$0xf]  ;;  %1287 = vmatprep.mubr.bf16.mxu0 %v4150_v59  ;;  %3888 = vmatpush3.bf16.msra.mxu1 %v4154_v40 }
  0xbf   : > { %v503_v60 = vrot.slane %v502_v47, 4  ;;  %v426_v2 = vld [vmem:[#allocation2 + $0x1c] sm:$0xf]  ;;  %v788_v3 = vrot.slane %v786_v48, 4  ;;  %865 = vst [vmem:[#allocation3 + $0x44] sm:$0xf] %v787_v63  ;;  %1288 = vmatmul.mubr.bf16.vlgmr.msra.gmra.mrb[0].mxu0 %v4148_v58  ;;  %3855 = vmatprep.mubr.msk.bf16.mxu1 %vm4503_vm0, %v4502_v0 }
  0xc0   : > { %403 = vst [vmem:[#allocation3 + $0x54] sm:$0xf] %v380_v1  ;;  %v513_v7 = vrot.slane %v512_v61, 4  ;;  %v515_v8 = vshll.u32 %v426_v2, 16  ;;  %v519_v9 = vshrl.u32 %v426_v2, 16  ;;  %v337_v10 = vld [vmem:[%s4803_s18 + $0x28] sm:$0xff]   ;;  %3662 = vmatpush3.bf16.msra.mxu0 %v4153_v45  ;;  %3889 = vmatprep.subr.bf16.mxu1 %v4502_v0 }
  0xc1   : > { %v508_v5 = vsel %vm4844_vm6, %v503_v60, %v507_v39  ;;  %v427_v6 = vld [vmem:[#allocation2 + $0x20] sm:$0xf]  ;;  %v727_v13 = vld [vmem:[#allocation2 + $0x1c] sm:$0xf]  ;;  %355 = vst [vmem:[#allocation2 + $0x28] sm:$0xff] %v337_v10   ;;  %v887_v14 = vld [vmem:[#allocation3 + $0x18] sm:$0xff]  ;;  %3663 = vmatprep.subr.bf16.mxu0 %v4158_v54 }
  0xc2   : > { %702 = vst [vmem:[#allocation3 + $0x40] sm:$0xf] %v508_v5  ;;  %v525_v11 = vshll.u32 %v427_v6, 16  ;;  %v529_v12 = vshrl.u32 %v427_v6, 16  ;;  %v4165_v15 = vld [vmem:[#allocation10 + $0x110] sm:$0xff]   ;;  %v517_v16 = vrot.slane %v515_v8, 5  ;;  %3890 = vmatpush3.bf16.msra.mxu1 %v4160_v62 }
  0xc3   : > { %v521_v17 = vrot.slane %v519_v9, 4  ;;  %v728_v18 = vld [vmem:[#allocation2 + $0x20] sm:$0xf]  ;;  %v789_v19 = vrot.slane %v727_v13, 5  ;;  %v4157_v20 = vld [vmem:[#allocation3 + $0x20] ss:$12 sps:$4 sm:$0xff]   ;;  %3891 = vmatprep.subr.bf16.mxu1 %v4502_v0 }
  0xc4   : > { %v4167_v21 = vld [vmem:[#allocation10 + $0x150] sm:$0xff]   ;;  %v527_v22 = vrot.slane %v525_v11, 5  ;;  %v792_v23 = vrot.slane %v728_v18, 5  ;;  %v518_v25 = vsel %vm4844_vm6, %v513_v7, %v517_v16  ;;  %v531_v31 = vrot.slane %v529_v12, 4  ;;  %3664 = vmatpush3.bf16.msra.mxu0 %v4159_v4  ;;  %v4172_v36 = vld [vmem:[#allocation10 + $0x118] sm:$0xff]   ;;  %v4179_v48 = vld [vmem:[#allocation10 + $0x120] sm:$0xff]  }
  0xc5   : > { %v4877_v24 = vld [vmem:[#allocation3 + $0x24] sm:$0xff]  ;;  %v522_v26 = vor.u32 %v521_v17, %v517_v16  ;;  %v790_v27 = vsel %vm4838_vm5, %v788_v3, %v789_v19  ;;  %v791_v28 = vrot.slane %v789_v19, 4  ;;  %703 = vst [vmem:[#allocation3 + $0x4c] sm:$0xf] %v518_v25  ;;  %3856 = vmatmul.mubr.bf16.gmra.mrb[4].mxu1 %v4157_v20  ;;  %3665 = vmatprep.subr.bf16.mxu0 %v4165_v15  ;;  %v4173_v41 = vld [vmem:[#allocation10 + $0xd8] sm:$0xff]   ;;  %v4180_v4 = vld [vmem:[#allocation10 + $0xe0] sm:$0xff]  }
  0xc6   : > { %v3326_v29 = vcombine.high %v887_v14, %v4877_v24  ;;  %v3325_v30 = vcombine.low %v887_v14, %v4877_v24  ;;  %866 = vst [vmem:[#allocation3 + $0x50] sm:$0xf] %v790_v27  ;;  %v4166_v32 = vld [vmem:[#allocation10 + $0xd0] sm:$0xff]   ;;  %v532_v38 = vor.u32 %v531_v31, %v527_v22  ;;  %3859 = vmatprep.mubr.msk.bf16.mxu1 %vm4503_vm0, %v4502_v0  ;;  %v4176_v42 = vld [vmem:[#allocation10 + $0x158] sm:$0xff]   ;;  %v794_v43 = vrot.slane %v792_v23, 4  ;;  %v4184_v20 = vld [vmem:[#allocation10 + $0x160] sm:$0xff]  }
  0xc7   : > { %v523_v33 = vrot.slane %v522_v26, 4  ;;  %v793_v34 = vsel %vm4838_vm5, %v791_v28, %v792_v23  ;;  %v381_v35 = vld [vmem:[#allocation2 + $0x20] sm:$0xf]  ;;  %v382_v37 = vld [vmem:[#allocation2 + $0x24] sm:$0xf]  ;;  %3892 = vmatpush3.bf16.msra.mxu1 %v4167_v21  ;;  %v4186_v23 = vld [vmem:[#allocation10 + $0x128] sm:$0xff]  }
  0xc8   : > { %1295 = vmatprep.mubr.bf16.mxu0 %v3326_v29  ;;  %867 = vst [vmem:[#allocation3 + $0x5c] sm:$0xf] %v793_v34  ;;  %404 = vst [vmem:[#allocation3 + $0x60] sm:$0xf] %v381_v35  ;;  %v4164_v44 = vld [vmem:[#allocation3 + $0x38] ss:$12 sps:$4 sm:$0xff]   ;;  %3666 = vmatpush3.bf16.msra.mxu0 %v4166_v32 }
  0xc9   : > { %v4888_v39 = vld [vmem:[#allocation3 + $0x34] ss:$12 sps:$4 sm:$0xff]   ;;  %v528_v40 = vsel %vm4844_vm6, %v523_v33, %v527_v22  ;;  %405 = vst [vmem:[#allocation3 + $0x6c] sm:$0xf] %v382_v37  ;;  %1296 = vmatmul.mubr.bf16.gmra.mrb[4].mxu0 %v3325_v30  ;;  %v428_v45 = vld [vmem:[#allocation2 + $0x24] sm:$0xf]  ;;  %3667 = vmatprep.subr.bf16.mxu0 %v4172_v36 }
  0xca   : > { %704 = vst [vmem:[#allocation3 + $0x58] sm:$0xf] %v528_v40  ;;  %v429_v46 = vld [vmem:[#allocation2 + $0x28] sm:$0xf]  ;;  %v533_v47 = vrot.slane %v532_v38, 4  ;;  %1303 = vmatprep.mubr.bf16.mxu0 %v4888_v39  ;;  %v535_v49 = vshll.u32 %v428_v45, 16  ;;  %3893 = vmatprep.subr.bf16.mxu1 %v4502_v0 }
  0xcb   : > { %v539_v51 = vshrl.u32 %v428_v45, 16  ;;  %v545_v53 = vshll.u32 %v429_v46, 16  ;;  %v549_v54 = vshrl.u32 %v429_v46, 16  ;;  %v4895_v55 = vld [vmem:[#allocation3 + $0x30] ss:$12 sps:$4 sm:$0xff]   ;;  %3894 = vmatpush3.bf16.msra.mxu1 %v4176_v42 }
  0xcc   : > { %v729_v56 = vld [vmem:[#allocation2 + $0x24] sm:$0xf]  ;;  %v730_v57 = vld [vmem:[#allocation2 + $0x28] sm:$0xf]  ;;  %v537_v58 = vrot.slane %v535_v49, 5  ;;  %3668 = vmatpush3.bf16.msra.mxu0 %v4173_v41  ;;  %3895 = vmatprep.subr.bf16.mxu1 %v4502_v0  ;;  %v4187_v28 = vld [vmem:[#allocation10 + $0xe8] sm:$0xff]  }
  0xcd   : > { %v541_v59 = vrot.slane %v539_v51, 4  ;;  %v795_v60 = vrot.slane %v729_v56, 5  ;;  %v798_v61 = vrot.slane %v730_v57, 5  ;;  %v547_v1 = vrot.slane %v545_v53, 5  ;;  %3860 = vmatmul.mubr.bf16.gmra.mrb[8].mxu1 %v4164_v44  ;;  %3669 = vmatprep.subr.bf16.mxu0 %v4179_v48  ;;  %v339_v5 = vld [vmem:[%s4803_s18 + $0x30] sm:$0xff]   ;;  %v341_v33 = vld [vmem:[%s4803_s18 + $0x38] sm:$0xff]  }
  0xce   : > { %v538_v62 = vsel %vm4844_vm6, %v533_v47, %v537_v58  ;;  %v551_v6 = vrot.slane %v549_v54, 4  ;;  %3863 = vmatprep.mubr.msk.bf16.mxu1 %vm4503_vm0, %v4502_v0  ;;  %357 = vst [vmem:[#allocation2 + $0x30] sm:$0xff] %v339_v5   ;;  %v383_v11 = vld [vmem:[#allocation2 + $0x28] sm:$0xf]  ;;  %v384_v12 = vld [vmem:[#allocation2 + $0x2c] sm:$0xf] }
  0xcf   : > { %v542_v63 = vor.u32 %v541_v59, %v537_v58  ;;  %705 = vst [vmem:[#allocation3 + $0x64] sm:$0xf] %v538_v62  ;;  %v796_v2 = vsel %vm4838_vm5, %v794_v43, %v795_v60  ;;  %v797_v3 = vrot.slane %v795_v60, 4  ;;  %v4171_v9 = vld [vmem:[#allocation3 + $0x50] ss:$12 sps:$4 sm:$0xff]   ;;  %v800_v22 = vrot.slane %v798_v61, 4  ;;  %3896 = vmatpush3.bf16.msra.mxu1 %v4184_v20 }
  0xd0   : > { %868 = vst [vmem:[#allocation3 + $0x68] sm:$0xf] %v796_v2  ;;  %v430_v13 = vld [vmem:[#allocation2 + $0x2c] sm:$0xf]  ;;  %v552_v14 = vor.u32 %v551_v6, %v547_v1  ;;  %3670 = vmatpush3.bf16.msra.mxu0 %v4180_v4  ;;  %406 = vst [vmem:[#allocation3 + $0x78] sm:$0xf] %v383_v11  ;;  %3897 = vmatprep.subr.bf16.mxu1 %v4502_v0 }
  0xd1   : > { %v4904_v7 = vld [vmem:[#allocation3 + $0x4c] ss:$12 sps:$4 sm:$0xff]   ;;  %v543_v8 = vrot.slane %v542_v63, 4  ;;  %1304 = vmatmul.mubr.bf16.gmra.mrb[8].mxu0 %v4895_v55  ;;  %v799_v10 = vsel %vm4838_vm5, %v797_v3, %v798_v61  ;;  %407 = vst [vmem:[#allocation3 + $0x84] sm:$0xf] %v384_v12  ;;  %v555_v16 = vshll.u32 %v430_v13, 16  ;;  %3671 = vmatprep.subr.bf16.mxu0 %v4186_v23 }
  0xd2   : > { %1311 = vmatprep.mubr.bf16.mxu0 %v4904_v7  ;;  %869 = vst [vmem:[#allocation3 + $0x74] sm:$0xf] %v799_v10  ;;  %v559_v17 = vshrl.u32 %v430_v13, 16  ;;  %v4914_v18 = vld [vmem:[#allocation3 + $0x48] ss:$12 sps:$4 sm:$0xff]   ;;  %v553_v19 = vrot.slane %v552_v14, 4 }
  0xd3   : > { %v548_v15 = vsel %vm4844_vm6, %v543_v8, %v547_v1  ;;  %v731_v21 = vld [vmem:[#allocation2 + $0x2c] sm:$0xf]  ;;  %v557_v25 = vrot.slane %v555_v16, 5  ;;  %359 = vst [vmem:[#allocation2 + $0x38] sm:$0xff] %v341_v33   ;;  %v4929_v47 = vld [vmem:[#allocation3 + $0x60] ss:$12 sps:$4 sm:$0xff]  }
  0xd4   : > { %706 = vst [vmem:[#allocation3 + $0x70] sm:$0xf] %v548_v15  ;;  %v561_v26 = vrot.slane %v559_v17, 4  ;;  %v801_v27 = vrot.slane %v731_v21, 5  ;;  %3672 = vmatpush3.bf16.msra.mxu0 %v4187_v28  ;;  %v4192_v59 = vld [vmem:[#allocation10 + $0x168] sm:$0xff]   ;;  %v4193_v61 = vld [vmem:[#allocation10 + $0x130] sm:$0xff]  }
  0xd5   : > { %v558_v29 = vsel %vm4844_vm6, %v553_v19, %v557_v25  ;;  %3864 = vmatmul.mubr.bf16.gmra.mrb[12].mxu1 %v4171_v9  ;;  %v431_v34 = vld [vmem:[#allocation2 + $0x30] sm:$0xf]  ;;  %v386_v42 = vld [vmem:[#allocation2 + $0x34] sm:$0xf]  ;;  %3673 = vmatprep.subr.bf16.mxu0 %v4193_v61  ;;  %v4196_v12 = vld [vmem:[#allocation10 + $0xf0] sm:$0xff]  }
  0xd6   : > { %v562_v30 = vor.u32 %v561_v26, %v557_v25  ;;  %v802_v31 = vsel %vm4838_vm5, %v800_v22, %v801_v27  ;;  %v803_v32 = vrot.slane %v801_v27, 4  ;;  %707 = vst [vmem:[#allocation3 + $0x7c] sm:$0xf] %v558_v29  ;;  %v732_v35 = vld [vmem:[#allocation2 + $0x30] sm:$0xf]  ;;  %3867 = vmatprep.mubr.msk.bf16.mxu1 %vm4503_vm0, %v4502_v0  ;;  %v565_v37 = vshll.u32 %v431_v34, 16  ;;  %3898 = vmatpush3.bf16.msra.mxu1 %v4192_v59 }
  0xd7   : > { %870 = vst [vmem:[#allocation3 + $0x80] sm:$0xf] %v802_v31  ;;  %v569_v38 = vshrl.u32 %v431_v34, 16  ;;  %v804_v40 = vrot.slane %v732_v35, 5  ;;  %v385_v41 = vld [vmem:[#allocation2 + $0x30] sm:$0xf]  ;;  %3899 = vmatprep.subr.bf16.mxu1 %v4502_v0 }
  0xd8   : > { %v563_v36 = vrot.slane %v562_v30, 4  ;;  %408 = vst [vmem:[#allocation3 + $0x90] sm:$0xf] %v385_v41  ;;  %v567_v45 = vrot.slane %v565_v37, 5  ;;  %409 = vst [vmem:[#allocation3 + $0x9c] sm:$0xf] %v386_v42  ;;  %3674 = vmatpush3.bf16.msra.mxu0 %v4196_v12 }
  0xd9   : > { %1312 = vmatmul.mubr.bf16.gmra.mrb[12].mxu0 %v4914_v18  ;;  %v4178_v44 = vld [vmem:[#allocation3 + $0x68] ss:$12 sps:$4 sm:$0xff]   ;;  %v805_v46 = vsel %vm4838_vm5, %v803_v32, %v804_v40  ;;  %v432_v48 = vld [vmem:[#allocation2 + $0x34] sm:$0xf]  ;;  %v571_v49 = vrot.slane %v569_v38, 4  ;;  %v806_v53 = vrot.slane %v804_v40, 4 }
  0xda   : > { %871 = vst [vmem:[#allocation3 + $0x8c] sm:$0xf] %v805_v46  ;;  %v733_v51 = vld [vmem:[#allocation2 + $0x34] sm:$0xf]  ;;  %v568_v54 = vsel %vm4844_vm6, %v563_v36, %v567_v45  ;;  %v575_v56 = vshll.u32 %v432_v48, 16  ;;  %v579_v57 = vshrl.u32 %v432_v48, 16 }
  0xdb   : > { %v4925_v43 = vld [vmem:[#allocation3 + $0x64] ss:$12 sps:$4 sm:$0xff]   ;;  %v807_v58 = vrot.slane %v733_v51, 5  ;;  %708 = vst [vmem:[#allocation3 + $0x88] sm:$0xf] %v568_v54  ;;  %v572_v60 = vor.u32 %v571_v49, %v567_v45  ;;  %v343_v10 = vld [vmem:[%s4803_s18 + $0x40] sm:$0xff]  }
  0xdc   : > { %1319 = vmatprep.mubr.bf16.mxu0 %v4925_v43  ;;  %v433_v62 = vld [vmem:[#allocation2 + $0x38] sm:$0xf]  ;;  %v577_v63 = vrot.slane %v575_v56, 5  ;;  %v581_v3 = vrot.slane %v579_v57, 4  ;;  %361 = vst [vmem:[#allocation2 + $0x40] sm:$0xff] %v343_v10   ;;  %v4199_v36 = vld [vmem:[#allocation10 + $0x170] sm:$0xff]  }
  0xdd   : > { %v808_v1 = vsel %vm4838_vm5, %v806_v53, %v807_v58  ;;  %3868 = vmatmul.mubr.bf16.gmra.mrb[16].mxu1 %v4178_v44  ;;  %v573_v2 = vrot.slane %v572_v60, 4  ;;  %v585_v4 = vshll.u32 %v433_v62, 16  ;;  %v589_v5 = vshrl.u32 %v433_v62, 16  ;;  %v734_v6 = vld [vmem:[#allocation2 + $0x38] sm:$0xf]  ;;  %v363_v40 = vld [vmem:[%s4811_s8] sm:$0xff]  }
  0xde   : > { %872 = vst [vmem:[#allocation3 + $0x98] sm:$0xf] %v808_v1  ;;  %3871 = vmatprep.mubr.msk.bf16.mxu1 %vm4503_vm0, %v4502_v0  ;;  %v809_v8 = vrot.slane %v807_v58, 4  ;;  %v810_v9 = vrot.slane %v734_v6, 5  ;;  %v387_v11 = vld [vmem:[#allocation2 + $0x38] sm:$0xf]  ;;  %v582_v14 = vor.u32 %v581_v3, %v577_v63  ;;  %3900 = vmatpush3.bf16.msra.mxu1 %v4199_v36 }
  0xdf   : > { %v578_v13 = vsel %vm4844_vm6, %v573_v2, %v577_v63  ;;  %v587_v15 = vrot.slane %v585_v4, 5  ;;  %v388_v16 = vld [vmem:[#allocation2 + $0x3c] sm:$0xf]  ;;  %410 = vst [vmem:[#allocation3 + $0xa8] sm:$0xf] %v387_v11  ;;  %v591_v19 = vrot.slane %v589_v5, 4  ;;  %3901 = vmatprep.subr.bf16.mxu1 %v4502_v0 }
  0xe0   : > { %v434_v17 = vld [vmem:[#allocation2 + $0x3c] sm:$0xf]  ;;  %709 = vst [vmem:[#allocation3 + $0x94] sm:$0xf] %v578_v13  ;;  %v811_v21 = vsel %vm4838_vm5, %v809_v8, %v810_v9  ;;  %411 = vst [vmem:[#allocation3 + $0xb4] sm:$0xf] %v388_v16 }
  0xe1   : > { %1320 = vmatmul.mubr.bf16.gmra.mrb[16].mxu0 %v4929_v47  ;;  %v4185_v20 = vld [vmem:[#allocation3 + $0x80] ss:$12 sps:$4 sm:$0xff]   ;;  %v595_v22 = vshll.u32 %v434_v17, 16  ;;  %v599_v23 = vshrl.u32 %v434_v17, 16  ;;  %v583_v25 = vrot.slane %v582_v14, 4  ;;  %v592_v26 = vor.u32 %v591_v19, %v587_v15  ;;  %368 = vst [vmem:[#allocation2 + $0x48] sm:$0xff] %v363_v40  }
  0xe2   : > { %873 = vst [vmem:[#allocation3 + $0xa4] sm:$0xf] %v811_v21  ;;  %v812_v27 = vrot.slane %v810_v9, 4  ;;  %v4945_v28 = vld [vmem:[#allocation3 + $0x7c] ss:$12 sps:$4 sm:$0xff]   ;;  %v4202_v46 = vld [vmem:[#allocation10 + $0x138] sm:$0xff]  }
  0xe3   : > { %v4947_v29 = vld [vmem:[#allocation3 + $0x78] ss:$12 sps:$4 sm:$0xff]   ;;  %v597_v30 = vrot.slane %v595_v22, 5  ;;  %v588_v31 = vsel %vm4844_vm6, %v583_v25, %v587_v15  ;;  %v593_v32 = vrot.slane %v592_v26, 4  ;;  %v601_v33 = vrot.slane %v599_v23, 4  ;;  %1327 = vmatprep.mubr.bf16.mxu0 %v4945_v28  ;;  %v4204_v54 = vld [vmem:[#allocation10 + $0xf8] sm:$0xff]   ;;  %3675 = vmatprep.subr.bf16.mxu0 %v4202_v46 }
  0xe4   : > { %v735_v34 = vld [vmem:[#allocation2 + $0x3c] sm:$0xf]  ;;  %710 = vst [vmem:[#allocation3 + $0xa0] sm:$0xf] %v588_v31  ;;  %v435_v41 = vld [vmem:[#allocation2 + $0x40] sm:$0xf]  ;;  %3676 = vmatpush3.bf16.msra.mxu0 %v4204_v54 }
  0xe5   : > { %v813_v35 = vrot.slane %v735_v34, 5  ;;  %3872 = vmatmul.mubr.bf16.gmra.mrb[20].mxu1 %v4185_v20  ;;  %v598_v37 = vsel %vm4844_vm6, %v593_v32, %v597_v30  ;;  %v602_v38 = vor.u32 %v601_v33, %v597_v30  ;;  %v736_v42 = vld [vmem:[#allocation2 + $0x40] sm:$0xf]  ;;  %v605_v49 = vshll.u32 %v435_v41, 16  ;;  %v390_v60 = vld [vmem:[#allocation2 + $0x44] sm:$0xf] }
  0xe6   : > { %3875 = vmatprep.mubr.msk.bf16.mxu1 %vm4503_vm0, %v4502_v0  ;;  %711 = vst [vmem:[#allocation3 + $0xac] sm:$0xf] %v598_v37  ;;  %v609_v51 = vshrl.u32 %v435_v41, 16  ;;  %v816_v53 = vrot.slane %v736_v42, 5  ;;  %v389_v57 = vld [vmem:[#allocation2 + $0x40] sm:$0xf] }
  0xe7   : > { %v814_v44 = vsel %vm4838_vm5, %v812_v27, %v813_v35  ;;  %v815_v45 = vrot.slane %v813_v35, 4  ;;  %v603_v48 = vrot.slane %v602_v38, 4  ;;  %v607_v58 = vrot.slane %v605_v49, 5  ;;  %412 = vst [vmem:[#allocation3 + $0xc0] sm:$0xf] %v389_v57  ;;  %v4206_v17 = vld [vmem:[#allocation10 + $0x178] sm:$0xff]  }
  0xe8   : > { %874 = vst [vmem:[#allocation3 + $0xb0] sm:$0xf] %v814_v44  ;;  %v436_v61 = vld [vmem:[#allocation2 + $0x44] sm:$0xf]  ;;  %v611_v62 = vrot.slane %v609_v51, 4  ;;  %v818_v6 = vrot.slane %v816_v53, 4  ;;  %3902 = vmatpush3.bf16.msra.mxu1 %v4206_v17 }
  0xe9   : > { %1328 = vmatmul.mubr.bf16.gmra.mrb[20].mxu0 %v4947_v29  ;;  %v4191_v56 = vld [vmem:[#allocation3 + $0x98] ss:$12 sps:$4 sm:$0xff]   ;;  %v817_v59 = vsel %vm4838_vm5, %v815_v45, %v816_v53  ;;  %413 = vst [vmem:[#allocation3 + $0xcc] sm:$0xf] %v390_v60  ;;  %v615_v63 = vshll.u32 %v436_v61, 16  ;;  %v619_v1 = vshrl.u32 %v436_v61, 16  ;;  %v608_v4 = vsel %vm4844_vm6, %v603_v48, %v607_v58  ;;  %3939 = vmatprep.subr.bf16.mxu1 %v4502_v0 }
  0xea   : > { %875 = vst [vmem:[#allocation3 + $0xbc] sm:$0xf] %v817_v59  ;;  %v4965_v3 = vld [vmem:[#allocation3 + $0x90] ss:$12 sps:$4 sm:$0xff]   ;;  %v612_v5 = vor.u32 %v611_v62, %v607_v58  ;;  %712 = vst [vmem:[#allocation3 + $0xb8] sm:$0xf] %v608_v4 }
  0xeb   : > { %v4963_v2 = vld [vmem:[#allocation3 + $0x94] ss:$12 sps:$4 sm:$0xff]   ;;  %v617_v8 = vrot.slane %v615_v63, 5  ;;  %v621_v9 = vrot.slane %v619_v1, 4  ;;  %v737_v10 = vld [vmem:[#allocation2 + $0x44] sm:$0xf] }
  0xec   : > { %1335 = vmatprep.mubr.bf16.mxu0 %v4963_v2  ;;  %v437_v11 = vld [vmem:[#allocation2 + $0x48] sm:$0xf]  ;;  %v613_v12 = vrot.slane %v612_v5, 4  ;;  %v819_v16 = vrot.slane %v737_v10, 5  ;;  %v4207_v21 = vld [vmem:[#allocation10 + $0x1c0] sm:$0xff]   ;;  %v1718_v38 = vrot.slane %v4888_v39, 1 }
  0xed   : > { %3876 = vmatmul.mubr.bf16.gmra.mrb[24].mxu1 %v4191_v56  ;;  %v4970_v13 = vld [vmem:[#allocation2 + $0x48] sm:$0xf]  ;;  %v622_v14 = vor.u32 %v621_v9, %v617_v8  ;;  %v625_v15 = vshll.u32 %v437_v11, 16  ;;  %v1501_v26 = vld [vmem:[#allocation3 + $0x18] sm:$0xee]  ;;  %3748 = vmatprep.subr.bf16.mxu0 %v4207_v21  ;;  %v629_v39 = vshrl.u32 %v437_v11, 16 }
  0xee   : > { %3879 = vmatprep.mubr.msk.bf16.mxu1 %vm4503_vm0, %v4502_v0  ;;  %v618_v19 = vsel %vm4844_vm6, %v613_v12, %v617_v8  ;;  %v822_v20 = vrot.slane %v4970_v13, 5  ;;  %v820_v25 = vsel %vm4838_vm5, %v818_v6, %v819_v16  ;;  %v821_v30 = vrot.slane %v819_v16, 4  ;;  %v4988_v33 = vld [vmem:[#allocation3 + $0xa8] ss:$12 sps:$4 sm:$0xff]   ;;  %v4209_v41 = vld [vmem:[#allocation3 + $0x38] ss:$12 sps:$4 sm:$0xff]  }
  0xef   : > { %v623_v22 = vrot.slane %v622_v14, 4  ;;  %v4978_v23 = vrot.slane %v625_v15, 5  ;;  %713 = vst [vmem:[#allocation3 + $0xc4] sm:$0xf] %v618_v19  ;;  %876 = vst [vmem:[#allocation3 + $0xc8] sm:$0xf] %v820_v25  ;;  %v3374_v35 = vcombine.high %v1501_v26, %v4877_v24  ;;  %v3373_v45 = vcombine.low %v1501_v26, %v4877_v24 }
  0xf0   : > { %v823_v34 = vsel %vm4838_vm5, %v821_v30, %v822_v20  ;;  %v4208_v36 = vld [vmem:[#allocation3 + $0x20] ss:$12 sps:$4 sm:$0xfe]   ;;  %v1721_v49 = vrot.slane %v4209_v41, 1  ;;  %v1715_v53 = vrot.slane %v4895_v55, 1  ;;  %v4211_v54 = vld [vmem:[#allocation10 + $0x200] sm:$0xff]  }
  0xf1   : > { %1336 = vmatmul.mubr.bf16.gmra.mrb[24].mxu0 %v4965_v3  ;;  %v4198_v27 = vld [vmem:[#allocation3 + $0xb0] ss:$12 sps:$4 sm:$0xff]   ;;  %v628_v31 = vsel %vm4844_vm6, %v623_v22, %v4978_v23  ;;  %v4986_v32 = vld [vmem:[#allocation3 + $0xac] ss:$12 sps:$4 sm:$0xff]   ;;  %877 = vst [vmem:[#allocation3 + $0xd4] sm:$0xf] %v823_v34 }
  0xf2   : > { %714 = vst [vmem:[#allocation3 + $0xd0] sm:$0xf] %v628_v31  ;;  %1343 = vmatprep.mubr.bf16.mxu0 %v4986_v32  ;;  %v1717_v37 = vrot.slane %v3374_v35, 1  ;;  %v5002_v42 = vld [vmem:[#allocation3 + $0xc0] ss:$12 sps:$4 sm:$0xff]   ;;  %v1720_v48 = vrot.slane %v4208_v36, 1 }
  0xf3   : > { %v1714_v51 = vrot.slane %v3373_v45, 1  ;;  %v1725_v56 = vrot.slane %v4904_v7, 1  ;;  %v4212_v57 = vld [vmem:[#allocation3 + $0x50] ss:$12 sps:$4 sm:$0xff]   ;;  %v631_v58 = vrot.slane %v629_v39, 4  ;;  %v4210_v60 = vld [vmem:[#allocation10 + $0x180] sm:$0xff]  }
  0xf4   : > { %v1719_v46 = vsel %vm1713_vm7, %v1717_v37, %v1718_v38  ;;  %v1722_v24 = vsel %vm1713_vm7, %v1720_v48, %v1721_v49  ;;  %v4213_v62 = vld [vmem:[#allocation10 + $0x1c8] sm:$0xff]   ;;  %v1727_v55 = vrot.slane %v4212_v57, 1  ;;  %v1723_v7 = vrot.slane %v4914_v18, 1  ;;  %v5020_v5 = vld [vmem:[#allocation3 + $0x68] ss:$12 sps:$4 sm:$0xff]   ;;  %v4221_v17 = vld [vmem:[#allocation10 + $0x1d8] sm:$0xff]  }
  0xf5   : > { %3880 = vmatmul.mubr.bf16.gmra.mrb[28].mxu1 %v4198_v27  ;;  %v1716_v59 = vsel %vm1713_vm7, %v1714_v51, %v1715_v53  ;;  %v1726_v61 = vsel %vm1713_vm7, %v1718_v38, %v1725_v56  ;;  %v4215_v63 = vld [vmem:[#allocation10 + $0x208] sm:$0xff]   ;;  %v632_v1 = vor.u32 %v631_v58, %v4978_v23  ;;  %v1731_v6 = vrot.slane %v4925_v43, 1  ;;  %v4217_v8 = vld [vmem:[#allocation10 + $0x1d0] sm:$0xff]   ;;  %v4222_v19 = vld [vmem:[#allocation10 + $0x198] sm:$0xff]   ;;  %s3186_s18 = sshll.u32 %s5400_s30, 4  ;;  %s5447_s18 = int_to_ptr.vmem [resolvable:$true] %s3186_s18 }
  0xf6   : > { %3883 = vmatprep.mubr.msk.bf16.mxu1 %vm4503_vm0, %v4502_v0  ;;  %v4214_v4 = vld [vmem:[#allocation10 + $0x188] sm:$0xff]   ;;  %v1728_v9 = vsel %vm1713_vm7, %v1721_v49, %v1727_v55  ;;  %v4219_v10 = vld [vmem:[#allocation10 + $0x210] sm:$0xff]   ;;  %v824_v18 = vrot.slane %v822_v20, 4  ;;  %v1724_v12 = vsel %vm1713_vm7, %v1715_v53, %v1723_v7  ;;  %v1729_v14 = vrot.slane %v4929_v47, 1  ;;  %v4223_v20 = vld [vmem:[#allocation10 + $0x218] sm:$0xff]   ;;  %s4365_s29 = scalar_lea.vmem %s5447_s18, 1152  ;;  %p4372_p8 = scmp.lt.s32.totalorder %s5447_s18, %s4370_s14 }
  0xf7   : > { %v5024_v11 = vrot.slane %v632_v1, 4  ;;  %v4218_v15 = vld [vmem:[#allocation10 + $0x190] sm:$0xff]   ;;  %v1732_v43 = vsel %vm1713_vm7, %v1725_v56, %v1731_v6  ;;  %v1737_v16 = vrot.slane %v4945_v28, 1  ;;  %v1733_v13 = vrot.slane %v5020_v5, 1  ;;  %v5037_v22 = vld [vmem:[#allocation3 + $0x80] ss:$12 sps:$4 sm:$0xff]   ;;  %p4366_p9 = scmp.ne.s32.totalorder %s5447_s18, %s4365_s29  ;;  %p4373_p2 = scmp.lt.s32.totalorder %s4371_s17, %s4365_s29 }
  0xf8   : > { %v4205_v44 = vld [vmem:[#allocation3 + $0xc8] ss:$12 sps:$4 sm:$0xff]   ;;  %v1735_v21 = vrot.slane %v4947_v29, 1  ;;  %v1743_v25 = vrot.slane %v4963_v2, 1  ;;  %v391_v27 = vld [vmem:[#allocation2 + $0x48] sm:$0xf] }
  0xf9   : > { %1344 = vmatmul.mubr.bf16.gmra.mrb[28].mxu0 %v4988_v33  ;;  %v5000_v40 = vld [vmem:[#allocation3 + $0xc4] ss:$12 sps:$4 sm:$0xff]   ;;  %v4225_v23 = vld [vmem:[#allocation10 + $0x1e0] sm:$0xff]   ;;  %414 = vst [vmem:[#allocation3 + $0xd8] sm:$0xf] %v391_v27  ;;  %v1734_v34 = vsel %vm1713_vm7, %v1727_v55, %v1733_v13  ;;  %v1738_v39 = vsel %vm1713_vm7, %v1731_v6, %v1737_v16  ;;  %v1739_v51 = vrot.slane %v5037_v22, 1  ;;  %p4367_p12 = pnand %p4366_p9, %p5575_p7  ;;  %p4374_p11 = por %p4373_p2, %p4372_p8 }
  0xfa   : > { %1351 = vmatprep.mubr.bf16.mxu0 %v5000_v40  ;;  %v365_v26 = vld [vmem:[%s4811_s8 + $0x8] sm:$0xff]   ;;  %v4232_v53 = vld [vmem:[#allocation10 + $0x228] sm:$0xff]   ;;  %v1736_v5 = vsel %vm1713_vm7, %v1729_v14, %v1735_v21  ;;  %v1747_v22 = vrot.slane %v4988_v33, 1  ;;  %v2452_v29 = vrot.slane %v5002_v42, 2 }
  0xfb   : > { %v392_v30 = vld [vmem:[#allocation2 + $0x4c] sm:$0xf]  ;;  %370 = vst [vmem:[#allocation2 + $0x50] sm:$0xff] %v365_v26   ;;  %v4226_v35 = vld [vmem:[#allocation10 + $0x1a0] sm:$0xff]   ;;  %v4230_v56 = vld [vmem:[#allocation10 + $0x1a8] sm:$0xff]   ;;  %v1744_v26 = vsel %vm1713_vm7, %v1737_v16, %v1743_v25  ;;  %p4368_p13 = pneg %p4367_p12 }
  0xfc   : > { %415 = vst [vmem:[#allocation3 + $0xe4] sm:$0xf] %v392_v30  ;;  %v438_v31 = vld [vmem:[#allocation2 + $0x4c] sm:$0xf]  ;;  %v4227_v36 = vld [vmem:[#allocation10 + $0x220] sm:$0xff]  }
  0xfd   : > { %3884 = vmatmul.mubr.bf16.gmra.mrb[32].mxu1 %v4205_v44  ;;  %v635_v37 = vshll.u32 %v438_v31, 16  ;;  %v639_v38 = vshrl.u32 %v438_v31, 16  ;;  %v739_v41 = vld [vmem:[#allocation2 + $0x4c] sm:$0xf]  ;;  %v4229_v44 = vld [vmem:[#allocation10 + $0x1e8] sm:$0xff]   ;;  %p4375_p6 = pnand %p4374_p11, %p4368_p13 }
  0xfe   : > { %3903 = vmatprep.mubr.msk.bf16.mxu1 %vm4503_vm0, %v4502_v0  ;;  %v825_v45 = vrot.slane %v739_v41, 5  ;;  %v4245_v31 = vld [vmem:[#allocation10 + $0x238] sm:$0xff]  }
  0xff   : > { %v637_v48 = vrot.slane %v635_v37, 5  ;;  %v641_v49 = vrot.slane %v639_v38, 4  ;;  %v1749_v37 = vrot.slane %v4986_v32, 1  ;;  %v4228_v38 = vld [vmem:[#allocation3 + $0xb0] ss:$12 sps:$4 sm:$0xff]  }
 0x100   : > { %v827_v58 = vrot.slane %v825_v45, 4  ;;  %v4251_v50 = vld [vmem:[#allocation3 + $0x4c] ss:$12 sps:$4 sm:$0xff]  }
 0x101   : > { %1352 = vmatmul.mubr.bf16.gmra.mrb[32].mxu0 %v5002_v42  ;;  %v642_v57 = vor.u32 %v641_v49, %v637_v48 }
 0x102   : > { %1974 = vmatprep.mubr.bf16.mxu0 %v1719_v46  ;;  %v1730_v46 = vsel %vm1713_vm7, %v1723_v7, %v1729_v14  ;;  %v439_v55 = vld [vmem:[#allocation2 + $0x50] sm:$0xf]  ;;  %v4241_v14 = vld [vmem:[#allocation10 + $0x1f8] sm:$0xff]  }
 0x103   : > { %v740_v1 = vld [vmem:[#allocation2 + $0x50] sm:$0xf]  ;;  %v645_v7 = vshll.u32 %v439_v55, 16 }
 0x104   : > { %v828_v6 = vrot.slane %v740_v1, 5  ;;  %v2954_v1 = vld [vmem:[%s5570_s7] sm:$0xff] }
 0x105   : > { %3904 = vmatmul.mubr.bf16.vlgmr.msra.gmra.mrb[36].mxu1 %v1722_v24  ;;  %v638_v24 = vsel %vm4844_vm6, %v5024_v11, %v637_v48  ;;  %v4239_v11 = vld [vmem:[#allocation10 + $0x230] sm:$0xff]   ;;  %v2446_v48 = vrot.slane %v4988_v33, 2 }
 0x106   : > { %3940 = vmatpush3.bf16.msra.mxu1 %v4211_v54  ;;  %3907 = vmatprep.mubr.msk.bf16.mxu1 %vm4503_vm0, %v4502_v0  ;;  %v826_v54 = vsel %vm4838_vm5, %v824_v18, %v825_v45  ;;  %715 = vst [vmem:[#allocation3 + $0xdc] sm:$0xf] %v638_v24  ;;  %v5077_v18 = vld [vmem:[#allocation2 + $0x54] sm:$0xf]  ;;  %v1750_v45 = vsel %vm1713_vm7, %v1743_v25, %v1749_v37 }
 0x107   : > { %3941 = vmatprep.subr.bf16.mxu1 %v4502_v0  ;;  %878 = vst [vmem:[#allocation3 + $0xe0] sm:$0xf] %v826_v54  ;;  %v5134_v25 = vsel %vm2418_vm8, %v2446_v48, %v2452_v29  ;;  %v659_v24 = vshrl.u32 %v5077_v18, 16 }
 0x109   : > { %1975 = vmatmul.mubr.bf16.vlgmr.msra.gmra.mrb[36].mxu0 %v1716_v59  ;;  %v4233_v59 = vld [vmem:[#allocation10 + $0x1f0] sm:$0xff]  }
 0x10a   : > { %3749 = vmatpush3.bf16.msra.mxu0 %v4210_v60  ;;  %1982 = vmatprep.mubr.bf16.mxu0 %v1726_v61  ;;  %v2448_v60 = vrot.slane %v4986_v32, 2  ;;  %v2454_v61 = vrot.slane %v5000_v40, 2 }
 0x10b   : > { %3750 = vmatprep.subr.bf16.mxu0 %v4213_v62  ;;  %3942 = vmatpush3.bf16.msra.mxu1 %v4215_v63  ;;  %v5063_v62 = vld [vmem:[#allocation3 + $0x98] ss:$12 sps:$4 sm:$0xff]   ;;  %v643_v63 = vrot.slane %v642_v57, 4 }
 0x10c   : > { %3943 = vmatprep.subr.bf16.mxu1 %v4502_v0 }
 0x10d   : > { %3908 = vmatmul.mubr.bf16.gmra.mrb[40].mxu1 %v1728_v9  ;;  %v5070_v9 = vsel %vm2418_vm8, %v2448_v60, %v2454_v61 }
 0x10e   : > { %3751 = vmatpush3.bf16.msra.mxu0 %v4214_v4  ;;  %3911 = vmatprep.mubr.msk.bf16.mxu1 %vm4503_vm0, %v4502_v0  ;;  %v649_v4 = vshrl.u32 %v439_v55, 16 }
 0x10f   : > { %3752 = vmatprep.subr.bf16.mxu0 %v4217_v8  ;;  %3944 = vmatpush3.bf16.msra.mxu1 %v4219_v10  ;;  %v393_v8 = vld [vmem:[#allocation2 + $0x50] sm:$0xf]  ;;  %v1740_v10 = vsel %vm1713_vm7, %v1733_v13, %v1739_v51  ;;  %v4236_v13 = vld [vmem:[#allocation10 + $0x1b0] sm:$0xff]  }
 0x110   : > { %3945 = vmatprep.subr.bf16.mxu1 %v4502_v0  ;;  %416 = vst [vmem:[#allocation3 + $0xf0] sm:$0xf] %v393_v8  ;;  %v4504_v8 = vmov 0  }
 0x111   : > { %1983 = vmatmul.mubr.bf16.gmra.mrb[40].mxu0 %v1724_v12  ;;  %v5079_v12 = vld [vmem:[#allocation2 + $0x54] sm:$0xf]  ;;  %4122 = vset.pattern.permute.xlu0 %v4504_v8 }
 0x112   : > { %1990 = vmatprep.mubr.bf16.mxu0 %v1732_v43  ;;  %3753 = vmatpush3.bf16.msra.mxu0 %v4218_v15  ;;  %v647_v15 = vrot.slane %v645_v7, 5  ;;  %v829_v43 = vsel %vm4838_vm5, %v827_v58, %v828_v6  ;;  %v394_v7 = vld [vmem:[#allocation2 + $0x54] sm:$0xf] }
 0x113   : > { %3754 = vmatprep.subr.bf16.mxu0 %v4221_v17  ;;  %3946 = vmatpush3.bf16.msra.mxu1 %v4223_v20  ;;  %v651_v17 = vrot.slane %v649_v4, 4  ;;  %879 = vst [vmem:[#allocation3 + $0xec] sm:$0xf] %v829_v43  ;;  %v830_v20 = vrot.slane %v828_v6, 4  ;;  %v661_v4 = vrot.slane %v659_v24, 4 }
 0x114   : > { %3947 = vmatprep.subr.bf16.mxu1 %v4502_v0  ;;  %v648_v27 = vsel %vm4844_vm6, %v643_v63, %v647_v15  ;;  %417 = vst [vmem:[#allocation3 + $0xfc] sm:$0xf] %v394_v7  ;;  %4123 = vset.pattern.permute.xlu1 %v4504_v8  ;;  %v4254_v8 = vld [vmem:[#allocation3 + $0x64] ss:$12 sps:$4 sm:$0xff]  }
 0x115   : > { %3912 = vmatmul.mubr.bf16.gmra.mrb[44].mxu1 %v1734_v34  ;;  %v652_v47 = vor.u32 %v651_v17, %v647_v15  ;;  %v1745_v34 = vrot.slane %v5063_v62, 1  ;;  %716 = vst [vmem:[#allocation3 + $0xe8] sm:$0xf] %v648_v27  ;;  %v1753_v62 = vrot.slane %v5002_v42, 1  ;;  %2974 = vperm.xlu0 %4122, %v2954_v1   ;;  %v2955_v15 = vld [vmem:[%s5570_s7 + $0x8] sm:$0xff]  ;;  %v2958_v27 = vld [vmem:[%s5570_s7 + $0x20] sm:$0xff] }
 0x116   : > { %3755 = vmatpush3.bf16.msra.mxu0 %v4222_v19  ;;  %3915 = vmatprep.mubr.msk.bf16.mxu1 %vm4503_vm0, %v4502_v0  ;;  %v655_v19 = vshll.u32 %v5077_v18, 16  ;;  %v4249_v1 = vld [vmem:[#allocation3 + $0x48] ss:$12 sps:$4 sm:$0xff]  }
 0x117   : > { %3756 = vmatprep.subr.bf16.mxu0 %v4225_v23  ;;  %3948 = vmatpush3.bf16.msra.mxu1 %v4227_v36  ;;  %v831_v23 = vrot.slane %v5079_v12, 5  ;;  %v653_v16 = vrot.slane %v652_v47, 4  ;;  %v4243_v36 = vld [vmem:[#allocation10 + $0x1b8] sm:$0xff]   ;;  %v1754_v18 = vsel %vm1713_vm7, %v1747_v22, %v1753_v62 }
 0x118   : > { %3949 = vmatprep.subr.bf16.mxu1 %v4502_v0  ;;  %v5098_v30 = vrot.slane %v655_v19, 5  ;;  %v2957_v19 = vld [vmem:[%s5570_s7 + $0x18] sm:$0xff]  ;;  %v2959_v12 = vld [vmem:[%s5570_s7 + $0x28] sm:$0xff] }
 0x119   : > { %1991 = vmatmul.mubr.bf16.gmra.mrb[44].mxu0 %v1730_v46  ;;  %v832_v28 = vsel %vm4838_vm5, %v830_v20, %v831_v23  ;;  %v1751_v46 = vrot.slane %v4228_v38, 1  ;;  %2979 = vperm.xlu0 %4122, %v2955_v15  }
 0x11a   : > { %1998 = vmatprep.mubr.bf16.mxu0 %v1738_v39  ;;  %3757 = vmatpush3.bf16.msra.mxu0 %v4226_v35  ;;  %880 = vst [vmem:[#allocation3 + $0xf8] sm:$0xf] %v832_v28  ;;  %v1741_v35 = vrot.slane %v4965_v3, 1  ;;  %v658_v41 = vsel %vm4844_vm6, %v653_v16, %v5098_v30  ;;  %v4231_v39 = vld [vmem:[#allocation3 + $0xc8] ss:$12 sps:$4 sm:$0xff]   ;;  %v662_v17 = vor.u32 %v661_v4, %v5098_v30 }
 0x11b   : > { %3758 = vmatprep.subr.bf16.mxu0 %v4229_v44  ;;  %3950 = vmatpush3.bf16.msra.mxu1 %v4232_v53  ;;  %v1746_v44 = vsel %vm1713_vm7, %v1739_v51, %v1745_v34  ;;  %717 = vst [vmem:[#allocation3 + $0xf4] sm:$0xf] %v658_v41  ;;  %v1752_v2 = vsel %vm1713_vm7, %v1745_v34, %v1751_v46  ;;  %v5136_v51 = vld [vmem:[#allocation3 + $0xd8] ss:$12 sps:$4 sm:$0xff]   ;;  %v5166_v6 = vld [vmem:[#allocation3 + $0xe0] ss:$12 sps:$4 sm:$0xff]  }
 0x11c   : > { %3951 = vmatprep.subr.bf16.mxu1 %v4502_v0  ;;  %v1742_v3 = vsel %vm1713_vm7, %v1735_v21, %v1741_v35  ;;  %v1755_v21 = vrot.slane %v5000_v40, 1  ;;  %v5128_v49 = vld [vmem:[#allocation3 + $0xdc] ss:$12 sps:$4 sm:$0xff]   ;;  %v1748_v54 = vsel %vm1713_vm7, %v1741_v35, %v1747_v22  ;;  %v2458_v58 = vrot.slane %v5136_v51, 2 }
 0x11d   : > { %3916 = vmatmul.mubr.bf16.gmra.mrb[48].mxu1 %v1740_v10  ;;  %v2460_v53 = vrot.slane %v5128_v49, 2  ;;  %v1761_v55 = vrot.slane %v5128_v49, 1  ;;  %v2956_v10 = vld [vmem:[%s5570_s7 + $0x10] sm:$0xff]  ;;  %2994 = vperm.xlu0 %4122, %v2958_v27   ;;  %v4246_v4 = vld [vmem:[#allocation3 + $0x30] ss:$12 sps:$4 sm:$0xfc]  }
 0x11e   : > { %3759 = vmatpush3.bf16.msra.mxu0 %v4230_v56  ;;  %3919 = vmatprep.mubr.msk.bf16.mxu1 %vm4503_vm0, %v4502_v0  ;;  %v1756_v56 = vsel %vm1713_vm7, %v1749_v37, %v1755_v21  ;;  %v5159_v40 = vsel %vm2418_vm8, %v2452_v29, %v2458_v58  ;;  %v4248_v22 = vld [vmem:[#allocation3 + $0x34] ss:$12 sps:$4 sm:$0xfc]   ;;  %v2419_v15 = vrot.slane %v4246_v4, 2 }
 0x11f   : > { %3760 = vmatprep.subr.bf16.mxu0 %v4233_v59  ;;  %3952 = vmatpush3.bf16.msra.mxu1 %v4239_v11  ;;  %v5147_v57 = vsel %vm2418_vm8, %v2454_v61, %v2460_v53  ;;  %v1757_v59 = vrot.slane %v4231_v39, 1  ;;  %v367_v61 = vld [vmem:[%s4811_s8 + $0x10] sm:$0x7]  ;;  %v1762_v43 = vsel %vm1713_vm7, %v1755_v21, %v1761_v55  ;;  %v2422_v24 = vrot.slane %v4248_v22, 2  ;;  %v4256_v27 = vld [vmem:[#allocation3 + $0x60] ss:$12 sps:$4 sm:$0xff]  }
 0x120   : > { %3953 = vmatprep.subr.bf16.mxu1 %v4502_v0  ;;  %372 = vst [vmem:[#allocation2 + $0x58] sm:$0x7] %v367_v61  ;;  %2984 = vperm.xlu1 %4123, %v2956_v10   ;;  %v4253_v61 = vld [vmem:[#allocation3 + $0x50] ss:$12 sps:$4 sm:$0xff]   ;;  %s3171_s8 = scalar_lea.sflag [#allocation7], %s4797_s12 }
 0x121   : > { %1999 = vmatmul.mubr.bf16.gmra.mrb[48].mxu0 %v1736_v5  ;;  %v1758_v42 = vsel %vm1713_vm7, %v1751_v46, %v1757_v59  ;;  %v1763_v5 = vrot.slane %v5166_v6, 1  ;;  %v4244_v35 = vld [vmem:[#allocation3 + $0xf8] ss:$0 sps:$4 sm:$0x11]   ;;  %v2965_v10 = vld [vmem:[%s5570_s7 + $0x58] sm:$0xff] }
 0x122   : > { %2006 = vmatprep.mubr.bf16.mxu0 %v1744_v26  ;;  %3761 = vmatpush3.bf16.msra.mxu0 %v4236_v13  ;;  %v5154_v63 = vld [vmem:[#allocation3 + $0xf0] sm:$0x11]  ;;  %v1759_v13 = vrot.slane %v5136_v51, 1  ;;  %v833_v26 = vrot.slane %v831_v23, 4  ;;  %v1769_v39 = vrot.slane %v4244_v35, 1 }
 0x123   : > { %3762 = vmatprep.subr.bf16.mxu0 %v4241_v14  ;;  %3954 = vmatpush3.bf16.msra.mxu1 %v4245_v31  ;;  %v3401_v11 = vcombine.high %v5154_v63, %v5154_v63  ;;  %v663_v31 = vrot.slane %v662_v17, 4  ;;  %v1764_v23 = vsel %vm1713_vm7, %v1757_v59, %v1763_v5  ;;  %v2423_v59 = vrot.slane %v4251_v50, 2  ;;  %v2966_v17 = vld [vmem:[%s5570_s7 + $0x60] sm:$0xff] }
 0x124   : > { %2989 = vperm.xlu1 %4123, %v2957_v19   ;;  %v2430_v19 = vrot.slane %v4254_v8, 2  ;;  %v4265_v50 = vld [vmem:[#allocation3 + $0x98] ss:$12 sps:$4 sm:$0xff]   ;;  %v4271_v8 = vld [vmem:[#allocation3 + $0xf0] ss:$12 sps:$4 sm:$0xff]  }
 0x125   : > { %3920 = vmatmul.mubr.bf16.gmra.mrb[52].mxu1 %v1746_v44  ;;  %v1767_v20 = vrot.slane %v3401_v11, 1  ;;  %v1760_v44 = vsel %vm1713_vm7, %v1753_v62, %v1759_v13  ;;  %v2963_v62 = vld [vmem:[%s5570_s7 + $0x48] sm:$0xff]  ;;  %v2424_v6 = vsel %vm2418_vm8, %v2422_v24, %v2423_v59 }
 0x126   : > { %3763 = vmatpush3.bf16.msra.mxu0 %v4243_v36  ;;  %3923 = vmatprep.mubr.msk.bf16.mxu1 %vm4503_vm0, %v4502_v0 }
 0x127   : > { %v441_v47 = vld [vmem:[#allocation2 + $0x58] sm:$0x7]  ;;  %v1768_v46 = vsel %vm1713_vm7, %v1761_v55, %v1767_v20  ;;  %v1770_v55 = vsel %vm1713_vm7, %v1763_v5, %v1769_v39  ;;  %v2967_v5 = vld [vmem:[%s5570_s7 + $0x68] sm:$0xff]  ;;  %v4257_v20 = vld [vmem:[#allocation3 + $0x68] ss:$12 sps:$4 sm:$0xff]   ;;  %v2444_v39 = vrot.slane %v4265_v50, 2 }
 0x128   : > { %v742_v30 = vld [vmem:[#allocation2 + $0x58] sm:$0x7]  ;;  %v665_v34 = vshll.u32 %v441_v47, 16  ;;  %v669_v16 = vshrl.u32 %v441_v47, 16  ;;  %2999 = vperm.xlu1 %4123, %v2959_v12   ;;  %v2968_v47 = vld [vmem:[%s5570_s7 + $0x70] sm:$0xff] }
 0x129   : > { %2007 = vmatmul.mubr.bf16.gmra.mrb[52].mxu0 %v1742_v3  ;;  %v395_v14 = vld [vmem:[#allocation2 + $0x58] sm:$0x3]  ;;  %v834_v28 = vrot.slane %v742_v30, 5  ;;  %v3400_v3 = vcombine.low %v5154_v63, %v5154_v63  ;;  %v4252_v63 = vld [vmem:[#allocation3 + $0x38] ss:$12 sps:$4 sm:$0xfc]   ;;  %v2431_v30 = vsel %vm2418_vm8, %v2423_v59, %v2430_v19 }
 0x12a   : > { %2014 = vmatprep.mubr.bf16.mxu0 %v1750_v45  ;;  %418 = vst [vmem:[#allocation3 + $0x108] sm:$0x3] %v395_v14  ;;  %v667_v36 = vrot.slane %v665_v34, 5  ;;  %v671_v38 = vrot.slane %v669_v16, 4  ;;  %v2960_v45 = vld [vmem:[%s5570_s7 + $0x30] sm:$0xff]  ;;  %v2425_v11 = vrot.slane %v4252_v63, 2 }
 0x12b   : > { %v835_v37 = vsel %vm4838_vm5, %v833_v26, %v834_v28  ;;  %v836_v41 = vrot.slane %v834_v28, 4  ;;  %3004 = vperm.xlu0 %4122, %v2960_v45   ;;  %v4258_v14 = vld [vmem:[#allocation3 + $0x7c] ss:$12 sps:$4 sm:$0xff]   ;;  %v2432_v34 = vrot.slane %v4257_v20, 2  ;;  %v2428_v28 = vrot.slane %v4256_v27, 2 }
 0x12c   : > { %881 = vst [vmem:[#allocation3 + $0x104] sm:$0xf] %v835_v37  ;;  %v668_v29 = vsel %vm4844_vm6, %v663_v31, %v667_v36  ;;  %v672_v21 = vor.u32 %v671_v38, %v667_v36  ;;  %v2969_v31 = vld [vmem:[%s5570_s7 + $0x78] sm:$0xff]  ;;  %v2970_v16 = vld [vmem:[%s5570_s7 + $0x80] sm:$0xff]  ;;  %v2436_v12 = vrot.slane %v4258_v14, 2 }
 0x12d   : > { %3924 = vmatmul.mubr.bf16.gmra.mrb[56].mxu1 %v1752_v2  ;;  %882 = vst [vmem:[#allocation3 + $0x110] sm:$0x3] %v836_v41  ;;  %v2961_v2 = vld [vmem:[%s5570_s7 + $0x38] sm:$0xff]  ;;  %718 = vst [vmem:[#allocation3 + $0x100] sm:$0xf] %v668_v29 }
 0x12e   : > { %3927 = vmatprep.mubr.msk.bf16.mxu1 %vm4503_vm0, %v4502_v0  ;;  %3009 = vperm.xlu1 %4123, %v2961_v2   ;;  %v4261_v36 = vld [vmem:[#allocation3 + $0x80] ss:$12 sps:$4 sm:$0xff]   ;;  %v4260_v38 = vld [vmem:[#allocation3 + $0x78] ss:$12 sps:$4 sm:$0xff]   ;;  %v2437_v41 = vsel %vm2418_vm8, %v2430_v19, %v2436_v12  ;;  %v4267_v63 = vld [vmem:[#allocation3 + $0xc8] ss:$12 sps:$4 sm:$0xff]  }
 0x12f   : > { %3014 = vperm.xlu0 %4122, %v2962_v52   ;;  %v2434_v45 = vrot.slane %v4260_v38, 2  ;;  %v4266_v52 = vld [vmem:[#allocation3 + $0xb0] ss:$12 sps:$4 sm:$0xff]   ;;  %v2456_v32 = vrot.slane %v4267_v63, 2 }
 0x131   : > { %2015 = vmatmul.mubr.bf16.gmra.mrb[56].mxu0 %v1748_v54  ;;  %v673_v54 = vrot.slane %v672_v21, 4  ;;  %v2435_v29 = vsel %vm2418_vm8, %v2428_v28, %v2434_v45  ;;  %v4264_v21 = vld [vmem:[#allocation3 + $0x90] ss:$12 sps:$4 sm:$0xff]  }
 0x132   : > { %2022 = vmatprep.mubr.bf16.mxu0 %v1756_v56  ;;  %v1765_v56 = vrot.slane %v3400_v3, 1  ;;  %3019 = vperm.xlu1 %4123, %v2963_v62   ;;  %v2438_v3 = vrot.slane %v4261_v36, 2  ;;  %v2450_v62 = vrot.slane %v4266_v52, 2 }
 0x133   : > { %719 = vst [vmem:[#allocation3 + $0x10c] sm:$0x3] %v673_v54  ;;  %v2440_v54 = vrot.slane %v4264_v21, 2 }
 0x134   : > { %v1766_v7 = vsel %vm1713_vm7, %v1759_v13, %v1765_v56  ;;  %v2439_v22 = vsel %vm2418_vm8, %v2432_v34, %v2438_v3  ;;  %v2445_v56 = vsel %vm2418_vm8, %v2438_v3, %v2444_v39 }
 0x135   : > { %3928 = vmatmul.mubr.bf16.gmra.mrb[60].mxu1 %v1758_v42  ;;  %v2964_v42 = vld [vmem:[%s5570_s7 + $0x50] sm:$0xff]  ;;  %v2441_v24 = vsel %vm2418_vm8, %v2434_v45, %v2440_v54 }
 0x136   : > { %3931 = vmatprep.mubr.msk.bf16.mxu1 %vm4503_vm0, %v4502_v0  ;;  %3024 = vperm.xlu0 %4122, %v2964_v42   ;;  %v4272_v42 = vld [vmem:[#allocation3 + $0xf8] ss:$12 sps:$4 sm:$0xff]  }
 0x137   : > { %3029 = vperm.xlu1 %4123, %v2965_v10  }
 0x139   : > { %2023 = vmatmul.mubr.bf16.gmra.mrb[60].mxu0 %v1754_v18  ;;  %v2426_v18 = vrot.slane %v4253_v61, 2  ;;  %v2447_v61 = vsel %vm2418_vm8, %v2440_v54, %v2446_v48 }
 0x13a   : > { %2030 = vmatprep.mubr.bf16.mxu0 %v1762_v43  ;;  %v2420_v43 = vrot.slane %v4249_v1, 2  ;;  %3034 = vperm.xlu0 %4122, %v2966_v17   ;;  %v4268_v1 = vld [vmem:[#allocation3 + $0xe0] ss:$12 sps:$4 sm:$0xff]  }
 0x13b   : > { %v2427_v13 = vsel %vm2418_vm8, %v2425_v11, %v2426_v18  ;;  %3039 = vperm.xlu1 %4123, %v2967_v5   ;;  %v2433_v35 = vsel %vm2418_vm8, %v2426_v18, %v2432_v34  ;;  %v2462_v4 = vrot.slane %v4268_v1, 2  ;;  %v2468_v11 = vrot.slane %v4272_v42, 2 }
 0x13c   : > { %v2421_v26 = vsel %vm2418_vm8, %v2419_v15, %v2420_v43  ;;  %v2429_v37 = vsel %vm2418_vm8, %v2420_v43, %v2428_v28  ;;  %v4275_v15 = vld [vmem:[#allocation3 + $0x110] ss:$0 sps:$4 sm:$0x33]  }
 0x13d   : > { %3932 = vmatmul.mubr.bf16.gmra.mrb[64].mxu1 %v1764_v23  ;;  %v2971_v23 = vld [vmem:[%s5570_s7 + $0x88] sm:$0xff]  ;;  %v2463_v48 = vsel %vm2418_vm8, %v2456_v32, %v2462_v4  ;;  %v2469_v18 = vsel %vm2418_vm8, %v2462_v4, %v2468_v11  ;;  %v2474_v17 = vrot.slane %v4275_v15, 2 }
 0x13e   : > { %3935 = vmatprep.mubr.msk.bf16.mxu1 %vm4503_vm0, %v4502_v0  ;;  %3044 = vperm.xlu0 %4122, %v2968_v47  }
 0x13f   : > { %3049 = vperm.xlu1 %4123, %v2969_v31   ;;  %v2475_v19 = vsel %vm2418_vm8, %v2468_v11, %v2474_v17 }
 0x141   : > { %2031 = vmatmul.mubr.bf16.gmra.mrb[64].mxu0 %v1760_v44  ;;  %v4262_v44 = vld [vmem:[#allocation3 + $0x94] ss:$12 sps:$4 sm:$0xff]  }
 0x142   : > { %2038 = vmatprep.mubr.bf16.mxu0 %v1768_v46  ;;  %3054 = vperm.xlu0 %4122, %v2970_v16   ;;  %v2442_v46 = vrot.slane %v4262_v44, 2 }
 0x143   : > { %3059 = vperm.xlu1 %4123, %v2971_v23  }
 0x144   : > { %v2443_v2 = vsel %vm2418_vm8, %v2436_v12, %v2442_v46  ;;  %v2449_v59 = vsel %vm2418_vm8, %v2442_v46, %v2448_v60  ;;  %v2457_v60 = vsel %vm2418_vm8, %v2450_v62, %v2456_v32 }
 0x145   : > { %3936 = vmatmul.mubr.bf16.gmra.mrb[68].mxu1 %v1770_v55  ;;  %v2451_v55 = vsel %vm2418_vm8, %v2444_v39, %v2450_v62 }
 0x146   : > { %3955 = vmatprep.mubr.msk.bf16.mxu1 %vm4503_vm0, %v4502_v0 }
 0x149   : > { %2039 = vmatmul.mubr.bf16.gmra.mrb[68].mxu0 %v1766_v7  ;;  %v4269_v7 = vld [vmem:[#allocation3 + $0xf4] ss:$12 sps:$4 sm:$0xff]  }
 0x14a   : > { %2679 = vmatprep.mubr.bf16.mxu0 %v2424_v6  ;;  %v2466_v33 = vrot.slane %v4269_v7, 2  ;;  %v2242_v6 = vld [vmem:[#allocation3 + $0x108] sm:$0x33] }
 0x14b   : > { %v3455_v10 = vcombine.high %v2242_v6, %v2242_v6  ;;  %v3454_v49 = vcombine.low %v2242_v6, %v2242_v6 }
 0x14d   : > { %3956 = vmatmul.mubr.bf16.vlgmr.msra.gmra.mrb[72].mxu1 %v2427_v13 }
 0x14e   : > { %3959 = vmatprep.mubr.msk.bf16.mxu1 %vm4503_vm0, %v4502_v0 }
 0x151   : > { %2680 = vmatmul.mubr.bf16.vlgmr.msra.gmra.mrb[72].mxu0 %v2421_v26 }
 0x152   : > { %2687 = vmatprep.mubr.bf16.mxu0 %v2431_v30 }
 0x155   : > { %3960 = vmatmul.mubr.bf16.gmra.mrb[76].mxu1 %v2433_v35 }
 0x156   : > { %3963 = vmatprep.mubr.msk.bf16.mxu1 %vm4503_vm0, %v4502_v0 }
 0x159   : > { %2688 = vmatmul.mubr.bf16.gmra.mrb[76].mxu0 %v2429_v37 }
 0x15a   : > { %2695 = vmatprep.mubr.bf16.mxu0 %v2437_v41 }
 0x15d   : > { %3964 = vmatmul.mubr.bf16.gmra.mrb[80].mxu1 %v2439_v22 }
 0x15e   : > { %3967 = vmatprep.mubr.msk.bf16.mxu1 %vm4503_vm0, %v4502_v0 }
 0x161   : > { %2696 = vmatmul.mubr.bf16.gmra.mrb[80].mxu0 %v2435_v29 }
 0x162   : > { %2703 = vmatprep.mubr.bf16.mxu0 %v2443_v2 }
 0x165   : > { %3968 = vmatmul.mubr.bf16.gmra.mrb[84].mxu1 %v2445_v56 }
 0x166   : > { %3971 = vmatprep.mubr.msk.bf16.mxu1 %vm4503_vm0, %v4502_v0 }
 0x169   : > { %2704 = vmatmul.mubr.bf16.gmra.mrb[84].mxu0 %v2441_v24 }
 0x16a   : > { %2711 = vmatprep.mubr.bf16.mxu0 %v2449_v59 }
 0x16d   : > { %3972 = vmatmul.mubr.bf16.gmra.mrb[88].mxu1 %v2451_v55 }
 0x16e   : > { %3975 = vmatprep.mubr.msk.bf16.mxu1 %vm4503_vm0, %v4502_v0 }
 0x171   : > { %2712 = vmatmul.mubr.bf16.gmra.mrb[88].mxu0 %v2447_v61 }
 0x172   : > { %2719 = vmatprep.mubr.bf16.mxu0 %v5070_v9  ;;  %v2467_v9 = vsel %vm2418_vm8, %v2460_v53, %v2466_v33 }
 0x175   : > { %3976 = vmatmul.mubr.bf16.gmra.mrb[92].mxu1 %v2457_v60 }
 0x176   : > { %3979 = vmatprep.mubr.msk.bf16.mxu1 %vm4503_vm0, %v4502_v0 }
 0x179   : > { %2720 = vmatmul.mubr.bf16.gmra.mrb[92].mxu0 %v5134_v25  ;;  %v2464_v25 = vrot.slane %v4271_v8, 2 }
 0x17a   : > { %2727 = vmatprep.mubr.bf16.mxu0 %v5147_v57  ;;  %v2472_v57 = vrot.slane %v3455_v10, 2 }
 0x17b   : > { %v2465_v43 = vsel %vm2418_vm8, %v2458_v58, %v2464_v25 }
 0x17c   : > { %v2473_v53 = vsel %vm2418_vm8, %v2466_v33, %v2472_v57 }
 0x17d   : > { %3980 = vmatmul.mubr.bf16.gmra.mrb[96].mxu1 %v2463_v48 }
 0x17e   : > { %3983 = vmatprep.mubr.msk.bf16.mxu1 %vm4503_vm0, %v4502_v0 }
 0x181   : > { %2728 = vmatmul.mubr.bf16.gmra.mrb[96].mxu0 %v5159_v40  ;;  %v2470_v40 = vrot.slane %v3454_v49, 2 }
 0x182   : > { %2735 = vmatprep.mubr.bf16.mxu0 %v2467_v9 }
 0x183   : > { %v2471_v5 = vsel %vm2418_vm8, %v2464_v25, %v2470_v40 }
 0x185   : > { %3984 = vmatmul.mubr.bf16.gmra.mrb[100].mxu1 %v2469_v18 }
 0x186   : > { %3987 = vmatprep.mubr.msk.bf16.mxu1 %vm4503_vm0, %v4502_v0 }
 0x189   : > { %2736 = vmatmul.mubr.bf16.gmra.mrb[100].mxu0 %v2465_v43 }
 0x18a   : > { %2743 = vmatprep.mubr.bf16.mxu0 %v2473_v53 }
 0x18d   : > { %3988 = vmatmul.mubr.bf16.gmra.mrb[104].mxu1 %v2475_v19 }
 0x190   : > { %v1394_v51 = vpop.f32.mrb[0].mxu1 }
 0x191   : > { %2744 = vmatmul.mubr.bf16.gmra.mrb[104].mxu0 %v2471_v5  ;;  %v3853_v13 = vpop.f32.mrb[1].mxu1 }
 0x192   : > { %v3590_v58 = vpop.f32.mrb[0].mxu0  ;;  %v1397_v20 = vpop.f32.mrb[2].mxu1 }
 0x193   : > { %v3591_v26 = vpop.f32.mrb[1].mxu0  ;;  %v3854_v27 = vpop.f32.mrb[3].mxu1 }
 0x194   : > { %v3592_v47 = vadd.f32 %v3591_v26, %v3590_v58  ;;  %v3593_v30 = vpop.f32.mrb[2].mxu0 }
 0x195   : > { %v3594_v14 = vpop.f32.mrb[3].mxu0 }
 0x196   : > { %v5296_v0 = vadd.f32 %v3592_v47, %v1394_v51  ;;  %v3595_v31 = vadd.f32 %v3594_v14, %v3593_v30 }
 0x198   : > { %v5298_v34 = vadd.f32 %v3595_v31, %v1397_v20  ;;  %v1402_v28 = vpop.f32.mrb[4].mxu1 }
 0x199   : > { %v3857_v16 = vpop.f32.mrb[5].mxu1 }
 0x19a   : > { %v1405_v23 = vpop.f32.mrb[6].mxu1 }
 0x19b   : > { %v3858_v36 = vpop.f32.mrb[7].mxu1 }
 0x19c   : > { %v3596_v12 = vpop.f32.mrb[4].mxu0 }
 0x19d   : > { %v3597_v35 = vpop.f32.mrb[5].mxu0 }
 0x19e   : > { %v3598_v37 = vadd.f32 %v3597_v35, %v3596_v12  ;;  %v3599_v38 = vpop.f32.mrb[6].mxu0 }
 0x19f   : > { %v3600_v41 = vpop.f32.mrb[7].mxu0 }
 0x1a0   : > { %v5300_v44 = vadd.f32 %v3598_v37, %v1402_v28  ;;  %v3601_v3 = vadd.f32 %v3600_v41, %v3599_v38  ;;  %v1410_v46 = vpop.f32.mrb[8].mxu1 }
 0x1a1   : > { %v3861_v22 = vpop.f32.mrb[9].mxu1 }
 0x1a2   : > { %v5302_v45 = vadd.f32 %v3601_v3, %v1405_v23  ;;  %v1413_v29 = vpop.f32.mrb[10].mxu1 }
 0x1a3   : > { %v3862_v2 = vpop.f32.mrb[11].mxu1 }
 0x1a4   : > { %v3602_v50 = vpop.f32.mrb[8].mxu0 }
 0x1a5   : > { %v3603_v21 = vpop.f32.mrb[9].mxu0 }
 0x1a6   : > { %v3604_v39 = vadd.f32 %v3603_v21, %v3602_v50  ;;  %v3605_v54 = vpop.f32.mrb[10].mxu0 }
 0x1a7   : > { %v3606_v56 = vpop.f32.mrb[11].mxu0 }
 0x1a8   : > { %v5304_v52 = vadd.f32 %v3604_v39, %v1410_v46  ;;  %v3607_v24 = vadd.f32 %v3606_v56, %v3605_v54  ;;  %v1418_v62 = vpop.f32.mrb[12].mxu1 }
 0x1a9   : > { %v3865_v55 = vpop.f32.mrb[13].mxu1 }
 0x1aa   : > { %v5306_v59 = vadd.f32 %v3607_v24, %v1413_v29  ;;  %v1421_v61 = vpop.f32.mrb[14].mxu1 }
 0x1ab   : > { %v3866_v60 = vpop.f32.mrb[15].mxu1 }
 0x1ac   : > { %v3608_v63 = vpop.f32.mrb[12].mxu0 }
 0x1ad   : > { %v3609_v32 = vpop.f32.mrb[13].mxu0 }
 0x1ae   : > { %v3610_v1 = vadd.f32 %v3609_v32, %v3608_v63  ;;  %v3611_v7 = vpop.f32.mrb[14].mxu0 }
 0x1af   : > { %v3612_v4 = vpop.f32.mrb[15].mxu0 }
 0x1b0   : > { %v5308_v33 = vadd.f32 %v3610_v1, %v1418_v62  ;;  %v3613_v48 = vadd.f32 %v3612_v4, %v3611_v7  ;;  %v1426_v6 = vpop.f32.mrb[16].mxu1 }
 0x1b1   : > { %v3869_v8 = vpop.f32.mrb[17].mxu1 }
 0x1b2   : > { %v5310_v42 = vadd.f32 %v3613_v48, %v1421_v61  ;;  %v1429_v10 = vpop.f32.mrb[18].mxu1 }
 0x1b3   : > { %v3870_v25 = vpop.f32.mrb[19].mxu1 }
 0x1b4   : > { %v3614_v9 = vpop.f32.mrb[16].mxu0 }
 0x1b5   : > { %v3615_v11 = vpop.f32.mrb[17].mxu0 }
 0x1b6   : > { %v3616_v57 = vadd.f32 %v3615_v11, %v3614_v9  ;;  %v3617_v18 = vpop.f32.mrb[18].mxu0 }
 0x1b7   : > { %v3618_v15 = vpop.f32.mrb[19].mxu0 }
 0x1b8   : > { %v5312_v43 = vadd.f32 %v3616_v57, %v1426_v6  ;;  %v3619_v49 = vadd.f32 %v3618_v15, %v3617_v18  ;;  %v1434_v17 = vpop.f32.mrb[20].mxu1 }
 0x1b9   : > { %v3873_v40 = vpop.f32.mrb[21].mxu1 }
 0x1ba   : > { %v5314_v53 = vadd.f32 %v3619_v49, %v1429_v10  ;;  %v1437_v5 = vpop.f32.mrb[22].mxu1 }
 0x1bb   : > { %v3874_v13 = vpop.f32.mrb[23].mxu1 }
 0x1bc   : > { %v3620_v19 = vpop.f32.mrb[20].mxu0 }
 0x1bd   : > { %v3621_v51 = vpop.f32.mrb[21].mxu0 }
 0x1be   : > { %v3622_v58 = vadd.f32 %v3621_v51, %v3620_v19  ;;  %v3623_v20 = vpop.f32.mrb[22].mxu0 }
 0x1bf   : > { %v3624_v26 = vpop.f32.mrb[23].mxu0 }
 0x1c0   : > { %v5316_v27 = vadd.f32 %v3622_v58, %v1434_v17  ;;  %v3625_v47 = vadd.f32 %v3624_v26, %v3623_v20  ;;  %v1442_v14 = vpop.f32.mrb[24].mxu1 }
 0x1c1   : > { %v3877_v31 = vpop.f32.mrb[25].mxu1 }
 0x1c2   : > { %v5318_v30 = vadd.f32 %v3625_v47, %v1437_v5  ;;  %v1445_v16 = vpop.f32.mrb[26].mxu1 }
 0x1c3   : > { %v3878_v23 = vpop.f32.mrb[27].mxu1 }
 0x1c4   : > { %v3626_v28 = vpop.f32.mrb[24].mxu0 }
 0x1c5   : > { %v3627_v12 = vpop.f32.mrb[25].mxu0 }
 0x1c6   : > { %v3628_v35 = vadd.f32 %v3627_v12, %v3626_v28  ;;  %v3629_v36 = vpop.f32.mrb[26].mxu0 }
 0x1c7   : > { %v3630_v37 = vpop.f32.mrb[27].mxu0 }
 0x1c8   : > { %v5320_v38 = vadd.f32 %v3628_v35, %v1442_v14  ;;  %v3631_v41 = vadd.f32 %v3630_v37, %v3629_v36  ;;  %v1450_v46 = vpop.f32.mrb[28].mxu1 }
 0x1c9   : > { %v3881_v22 = vpop.f32.mrb[29].mxu1 }
 0x1ca   : > { %v5322_v3 = vadd.f32 %v3631_v41, %v1445_v16  ;;  %v1453_v29 = vpop.f32.mrb[30].mxu1 }
 0x1cb   : > { %v3882_v2 = vpop.f32.mrb[31].mxu1 }
 0x1cc   : > { %v3632_v50 = vpop.f32.mrb[28].mxu0 }
 0x1cd   : > { %v3633_v21 = vpop.f32.mrb[29].mxu0 }
 0x1ce   : > { %v3634_v39 = vadd.f32 %v3633_v21, %v3632_v50  ;;  %v3635_v54 = vpop.f32.mrb[30].mxu0 }
 0x1cf   : > { %v3636_v56 = vpop.f32.mrb[31].mxu0 }
 0x1d0   : > { %v5324_v24 = vadd.f32 %v3634_v39, %v1450_v46  ;;  %v3637_v62 = vadd.f32 %v3636_v56, %v3635_v54  ;;  %v1458_v63 = vpop.f32.mrb[32].mxu1 }
 0x1d1   : > { %v3885_v61 = vpop.f32.mrb[33].mxu1 }
 0x1d2   : > { %v5326_v55 = vadd.f32 %v3637_v62, %v1453_v29  ;;  %v1461_v60 = vpop.f32.mrb[34].mxu1 }
 0x1d3   : > { %v3886_v7 = vpop.f32.mrb[35].mxu1 }
 0x1d4   : > { %v3638_v32 = vpop.f32.mrb[32].mxu0 }
 0x1d5   : > { %v3639_v1 = vpop.f32.mrb[33].mxu0 }
 0x1d6   : > { %v3640_v4 = vadd.f32 %v3639_v1, %v3638_v32  ;;  %v3641_v48 = vpop.f32.mrb[34].mxu0 }
 0x1d7   : > { %v3642_v6 = vpop.f32.mrb[35].mxu0 }
 0x1d8   : > { %v5328_v8 = vadd.f32 %v3640_v4, %v1458_v63  ;;  %v3643_v9 = vadd.f32 %v3642_v6, %v3641_v48  ;;  %v2081_v11 = vpop.f32.mrb[36].mxu1 }
 0x1d9   : > { %v3905_v25 = vpop.f32.mrb[37].mxu1 }
 0x1da   : > { %v5330_v10 = vadd.f32 %v3643_v9, %v1461_v60  ;;  %v2084_v18 = vpop.f32.mrb[38].mxu1 }
 0x1db   : > { %v3906_v49 = vpop.f32.mrb[39].mxu1 }
 0x1dc   : > { %v3677_v57 = vpop.f32.mrb[36].mxu0 }
 0x1dd   : > { %v3678_v15 = vpop.f32.mrb[37].mxu0 }
 0x1de   : > { %v3679_v17 = vadd.f32 %v3678_v15, %v3677_v57  ;;  %v3680_v40 = vpop.f32.mrb[38].mxu0 }
 0x1df   : > { %v3681_v19 = vpop.f32.mrb[39].mxu0 }
 0x1e0   : > { %v2082_v5 = vadd.f32 %v3679_v17, %v2081_v11  ;;  %v3682_v51 = vadd.f32 %v3681_v19, %v3680_v40  ;;  %v2089_v20 = vpop.f32.mrb[40].mxu1 }
 0x1e1   : > { %v3909_v26 = vpop.f32.mrb[41].mxu1 }
 0x1e2   : > { %v5333_v13 = vadd.f32 %v2082_v5, %v5296_v0  ;;  %v2085_v58 = vadd.f32 %v3682_v51, %v2084_v18  ;;  %v2092_v31 = vpop.f32.mrb[42].mxu1 }
 0x1e3   : > { %v3910_v16 = vpop.f32.mrb[43].mxu1 }
 0x1e4   : > { %v5336_v47 = vadd.f32 %v2085_v58, %v5298_v34  ;;  %v3683_v14 = vpop.f32.mrb[40].mxu0 }
 0x1e5   : > { %v3684_v28 = vpop.f32.mrb[41].mxu0 }
 0x1e6   : > { %v3685_v12 = vadd.f32 %v3684_v28, %v3683_v14  ;;  %v3686_v23 = vpop.f32.mrb[42].mxu0 }
 0x1e7   : > { %v3687_v35 = vpop.f32.mrb[43].mxu0 }
 0x1e8   : > { %v2090_v36 = vadd.f32 %v3685_v12, %v2089_v20  ;;  %v3688_v37 = vadd.f32 %v3687_v35, %v3686_v23  ;;  %v2097_v46 = vpop.f32.mrb[44].mxu1 }
 0x1e9   : > { %v3913_v22 = vpop.f32.mrb[45].mxu1 }
 0x1ea   : > { %v5339_v41 = vadd.f32 %v2090_v36, %v5300_v44  ;;  %v2093_v0 = vadd.f32 %v3688_v37, %v2092_v31  ;;  %v2100_v29 = vpop.f32.mrb[46].mxu1 }
 0x1eb   : > { %v3914_v2 = vpop.f32.mrb[47].mxu1 }
 0x1ec   : > { %v5342_v50 = vadd.f32 %v2093_v0, %v5302_v45  ;;  %v3689_v34 = vpop.f32.mrb[44].mxu0 }
 0x1ed   : > { %v3690_v21 = vpop.f32.mrb[45].mxu0 }
 0x1ee   : > { %v3691_v39 = vadd.f32 %v3690_v21, %v3689_v34  ;;  %v3692_v54 = vpop.f32.mrb[46].mxu0 }
 0x1ef   : > { %v3693_v56 = vpop.f32.mrb[47].mxu0 }
 0x1f0   : > { %v2098_v62 = vadd.f32 %v3691_v39, %v2097_v46  ;;  %v3694_v63 = vadd.f32 %v3693_v56, %v3692_v54  ;;  %v2105_v32 = vpop.f32.mrb[48].mxu1 }
 0x1f1   : > { %v3917_v60 = vpop.f32.mrb[49].mxu1 }
 0x1f2   : > { %v5345_v61 = vadd.f32 %v2098_v62, %v5304_v52  ;;  %v2101_v44 = vadd.f32 %v3694_v63, %v2100_v29  ;;  %v2108_v7 = vpop.f32.mrb[50].mxu1 }
 0x1f3   : > { %v3918_v48 = vpop.f32.mrb[51].mxu1 }
 0x1f4   : > { %v5348_v1 = vadd.f32 %v2101_v44, %v5306_v59  ;;  %v3695_v45 = vpop.f32.mrb[48].mxu0 }
 0x1f5   : > { %v3696_v4 = vpop.f32.mrb[49].mxu0 }
 0x1f6   : > { %v3697_v6 = vadd.f32 %v3696_v4, %v3695_v45  ;;  %v3698_v9 = vpop.f32.mrb[50].mxu0 }
 0x1f7   : > { %v3699_v11 = vpop.f32.mrb[51].mxu0 }
 0x1f8   : > { %v2106_v25 = vadd.f32 %v3697_v6, %v2105_v32  ;;  %v3700_v57 = vadd.f32 %v3699_v11, %v3698_v9  ;;  %v2113_v15 = vpop.f32.mrb[52].mxu1 }
 0x1f9   : > { %v3921_v49 = vpop.f32.mrb[53].mxu1 }
 0x1fa   : > { %v5351_v18 = vadd.f32 %v2106_v25, %v5308_v33  ;;  %v2109_v52 = vadd.f32 %v3700_v57, %v2108_v7  ;;  %v2116_v40 = vpop.f32.mrb[54].mxu1 }
 0x1fb   : > { %v3922_v5 = vpop.f32.mrb[55].mxu1 }
 0x1fc   : > { %v5354_v17 = vadd.f32 %v2109_v52, %v5310_v42  ;;  %v3701_v59 = vpop.f32.mrb[52].mxu0 }
 0x1fd   : > { %v3702_v19 = vpop.f32.mrb[53].mxu0 }
 0x1fe   : > { %v3703_v51 = vadd.f32 %v3702_v19, %v3701_v59  ;;  %v3704_v58 = vpop.f32.mrb[54].mxu0 }
 0x1ff   : > { %v3705_v20 = vpop.f32.mrb[55].mxu0 }
 0x200   : > { %v2114_v26 = vadd.f32 %v3703_v51, %v2113_v15  ;;  %v3706_v14 = vadd.f32 %v3705_v20, %v3704_v58  ;;  %v2121_v28 = vpop.f32.mrb[56].mxu1 }
 0x201   : > { %v3925_v16 = vpop.f32.mrb[57].mxu1 }
 0x202   : > { %v5357_v31 = vadd.f32 %v2114_v26, %v5312_v43  ;;  %v2117_v33 = vadd.f32 %v3706_v14, %v2116_v40  ;;  %v2124_v23 = vpop.f32.mrb[58].mxu1 }
 0x203   : > { %v3926_v36 = vpop.f32.mrb[59].mxu1 }
 0x204   : > { %v5360_v12 = vadd.f32 %v2117_v33, %v5314_v53  ;;  %v3707_v42 = vpop.f32.mrb[56].mxu0 }
 0x205   : > { %v3708_v35 = vpop.f32.mrb[57].mxu0 }
 0x206   : > { %v3709_v37 = vadd.f32 %v3708_v35, %v3707_v42  ;;  %v3710_v0 = vpop.f32.mrb[58].mxu0 }
 0x207   : > { %v3711_v46 = vpop.f32.mrb[59].mxu0 }
 0x208   : > { %v2122_v22 = vadd.f32 %v3709_v37, %v2121_v28  ;;  %v3712_v34 = vadd.f32 %v3711_v46, %v3710_v0  ;;  %v2129_v21 = vpop.f32.mrb[60].mxu1 }
 0x209   : > { %v3929_v2 = vpop.f32.mrb[61].mxu1 }
 0x20a   : > { %v5363_v29 = vadd.f32 %v2122_v22, %v5316_v27  ;;  %v2125_v43 = vadd.f32 %v3712_v34, %v2124_v23  ;;  %v2132_v54 = vpop.f32.mrb[62].mxu1 }
 0x20b   : > { %v3930_v62 = vpop.f32.mrb[63].mxu1 }
 0x20c   : > { %v5366_v39 = vadd.f32 %v2125_v43, %v5318_v30  ;;  %v3713_v53 = vpop.f32.mrb[60].mxu0 }
 0x20d   : > { %v3714_v56 = vpop.f32.mrb[61].mxu0 }
 0x20e   : > { %v3715_v63 = vadd.f32 %v3714_v56, %v3713_v53  ;;  %v3716_v44 = vpop.f32.mrb[62].mxu0 }
 0x20f   : > { %v3717_v32 = vpop.f32.mrb[63].mxu0 }
 0x210   : > { %v2130_v60 = vadd.f32 %v3715_v63, %v2129_v21  ;;  %v3718_v45 = vadd.f32 %v3717_v32, %v3716_v44  ;;  %v2137_v4 = vpop.f32.mrb[64].mxu1 }
 0x211   : > { %v3933_v48 = vpop.f32.mrb[65].mxu1 }
 0x212   : > { %v5369_v7 = vadd.f32 %v2130_v60, %v5320_v38  ;;  %v2133_v27 = vadd.f32 %v3718_v45, %v2132_v54  ;;  %v2140_v9 = vpop.f32.mrb[66].mxu1  ;;  %v2975_v54 = vpop.permute.xlu0 %2974 }
 0x213   : > { %v3934_v25 = vpop.f32.mrb[67].mxu1 }
 0x214   : > { %v5372_v6 = vadd.f32 %v2133_v27, %v5322_v3  ;;  %v3719_v30 = vpop.f32.mrb[64].mxu0 }
 0x215   : > { %v3720_v11 = vpop.f32.mrb[65].mxu0 }
 0x216   : > { %v3721_v57 = vadd.f32 %v3720_v11, %v3719_v30  ;;  %v3722_v52 = vpop.f32.mrb[66].mxu0 }
 0x217   : > { %v3723_v15 = vpop.f32.mrb[67].mxu0 }
 0x218   : > { %v2138_v49 = vadd.f32 %v3721_v57, %v2137_v4  ;;  %v3724_v59 = vadd.f32 %v3723_v15, %v3722_v52  ;;  %v2145_v19 = vpop.f32.mrb[68].mxu1  ;;  %v2980_v57 = vpop.permute.xlu0 %2979 }
 0x219   : > { %v3937_v5 = vpop.f32.mrb[69].mxu1 }
 0x21a   : > { %v5375_v40 = vadd.f32 %v2138_v49, %v5324_v24  ;;  %v2141_v38 = vadd.f32 %v3724_v59, %v2140_v9  ;;  %v2148_v58 = vpop.f32.mrb[70].mxu1  ;;  %v2985_v5 = vpop.permute.xlu1 %2984 }
 0x21b   : > { %v3938_v26 = vpop.f32.mrb[71].mxu1 }
 0x21c   : > { %v5378_v51 = vadd.f32 %v2141_v38, %v5326_v55  ;;  %v3725_v3 = vpop.f32.mrb[68].mxu0 }
 0x21d   : > { %v3726_v20 = vpop.f32.mrb[69].mxu0 }
 0x21e   : > { %v3727_v14 = vadd.f32 %v3726_v20, %v3725_v3  ;;  %v3728_v33 = vpop.f32.mrb[70].mxu0 }
 0x21f   : > { %v3729_v28 = vpop.f32.mrb[71].mxu0 }
 0x220   : > { %v2146_v16 = vadd.f32 %v3727_v14, %v2145_v19  ;;  %v3730_v42 = vadd.f32 %v3729_v28, %v3728_v33  ;;  %v2786_v35 = vpop.f32.mrb[72].mxu1 }
 0x221   : > { %v3957_v36 = vpop.f32.mrb[73].mxu1 }
 0x222   : > { %v5381_v23 = vadd.f32 %v2146_v16, %v5328_v8  ;;  %v2149_v24 = vadd.f32 %v3730_v42, %v2148_v58  ;;  %v2789_v0 = vpop.f32.mrb[74].mxu1  ;;  %v5389_v8 = vld [vmem:[%s5571_s2] ss:$0 sm:$0xff] }
 0x223   : > { %v3958_v22 = vpop.f32.mrb[75].mxu1 }
 0x224   : > { %v5384_v37 = vadd.f32 %v2149_v24, %v5330_v10  ;;  %v3764_v55 = vpop.f32.mrb[72].mxu0 }
 0x225   : > { %v3765_v46 = vpop.f32.mrb[73].mxu0 }
 0x226   : > { %v3766_v34 = vadd.f32 %v3765_v46, %v3764_v55  ;;  %v3767_v43 = vpop.f32.mrb[74].mxu0  ;;  %v2990_v46 = vpop.permute.xlu1 %2989 }
 0x227   : > { %v3768_v21 = vpop.f32.mrb[75].mxu0 }
 0x228   : > { %v2787_v2 = vadd.f32 %v3766_v34, %v2786_v35  ;;  %v3769_v53 = vadd.f32 %v3768_v21, %v3767_v43  ;;  %v2794_v10 = vpop.f32.mrb[76].mxu1 }
 0x229   : > { %v3961_v63 = vpop.f32.mrb[77].mxu1 }
 0x22a   : > { %v2857_v56 = vadd.f32 %v2787_v2, %v5333_v13  ;;  %v2790_v62 = vadd.f32 %v3769_v53, %v2789_v0  ;;  %v2797_v45 = vpop.f32.mrb[78].mxu1 }
 0x22b   : > { %v3962_v4 = vpop.f32.mrb[79].mxu1 }
 0x22c   : > { %v2858_v44 = vadd.f32 %v2790_v62, %v5336_v47  ;;  %v3770_v32 = vpop.f32.mrb[76].mxu0  ;;  %v2918_v60 = vadd.f32 %v5389_v8, %v2857_v56 }
 0x22d   : > { %v3771_v27 = vpop.f32.mrb[77].mxu0 }
 0x22e   : > { %v2936_v48 = vmax.f32 %v2918_v60, 0.0  ;;  %v3772_v30 = vadd.f32 %v3771_v27, %v3770_v32  ;;  %v3773_v9 = vpop.f32.mrb[78].mxu0  ;;  %v2919_v11 = vadd.f32 %v5389_v8, %v2858_v44 }
 0x22f   : > { %v3774_v25 = vpop.f32.mrb[79].mxu0 }
 0x230   : > { %v2795_v52 = vadd.f32 %v3772_v30, %v2794_v10  ;;  %v3775_v13 = vadd.f32 %v3774_v25, %v3773_v9  ;;  %v2937_v15 = vmax.f32 %v2919_v11, 0.0  ;;  %v3062_v49 = vmul.f32 %v2975_v54, %v2936_v48  ;;  %v2802_v19 = vpop.f32.mrb[80].mxu1  ;;  %v3000_v11 = vpop.permute.xlu1 %2999 }
 0x231   : > { %v3965_v3 = vpop.f32.mrb[81].mxu1  ;;  %v2995_v25 = vpop.permute.xlu0 %2994 }
 0x232   : > { %v2859_v47 = vadd.f32 %v2795_v52, %v5339_v41  ;;  %v2798_v59 = vadd.f32 %v3775_v13, %v2797_v45  ;;  %v3063_v38 = vmul.f32 %v2980_v57, %v2937_v15  ;;  %v2805_v33 = vpop.f32.mrb[82].mxu1 }
 0x233   : > { %v3966_v16 = vpop.f32.mrb[83].mxu1 }
 0x234   : > { %v2860_v58 = vadd.f32 %v2798_v59, %v5342_v50  ;;  %v3524_v20 = vpack.c.bf16 %v3063_v38, %v3062_v49  ;;  %v2920_v26 = vadd.f32 %v5389_v8, %v2859_v47  ;;  %v3776_v14 = vpop.f32.mrb[80].mxu0 }
 0x235   : > { %v3777_v28 = vpop.f32.mrb[81].mxu0 }
 0x236   : > { %3525 = vst [vmem:[%s5400_s30] sm:$0xff] %v3524_v20   ;;  %v2938_v41 = vmax.f32 %v2920_v26, 0.0  ;;  %v3778_v42 = vadd.f32 %v3777_v28, %v3776_v14  ;;  %v2921_v24 = vadd.f32 %v5389_v8, %v2860_v58  ;;  %v3779_v35 = vpop.f32.mrb[82].mxu0 }
 0x237   : > { %v3780_v36 = vpop.f32.mrb[83].mxu0 }
 0x238   : > { %v2803_v55 = vadd.f32 %v3778_v42, %v2802_v19  ;;  %v2939_v50 = vmax.f32 %v2921_v24, 0.0  ;;  %v3781_v0 = vadd.f32 %v3780_v36, %v3779_v35  ;;  %v3064_v22 = vmul.f32 %v2985_v5, %v2938_v41  ;;  %v2810_v2 = vpop.f32.mrb[84].mxu1  ;;  %v3010_v42 = vpop.permute.xlu1 %3009 }
 0x239   : > { %v3969_v53 = vpop.f32.mrb[85].mxu1  ;;  %v3005_v24 = vpop.permute.xlu0 %3004 }
 0x23a   : > { %v2861_v34 = vadd.f32 %v2803_v55, %v5345_v61  ;;  %v3065_v43 = vmul.f32 %v2990_v46, %v2939_v50  ;;  %v2806_v21 = vadd.f32 %v3781_v0, %v2805_v33  ;;  %v2813_v63 = vpop.f32.mrb[86].mxu1 }
 0x23b   : > { %v3970_v32 = vpop.f32.mrb[87].mxu1 }
 0x23c   : > { %v3529_v54 = vpack.c.bf16 %v3065_v43, %v3064_v22  ;;  %v2862_v56 = vadd.f32 %v2806_v21, %v5348_v1  ;;  %v2922_v62 = vadd.f32 %v5389_v8, %v2861_v34  ;;  %v3782_v10 = vpop.f32.mrb[84].mxu0 }
 0x23d   : > { %v3783_v44 = vpop.f32.mrb[85].mxu0 }
 0x23e   : > { %3566 = vst [vmem:[%s5400_s30 + $0x8] sm:$0xff] %v3529_v54   ;;  %v2923_v60 = vadd.f32 %v5389_v8, %v2862_v56  ;;  %v2940_v45 = vmax.f32 %v2922_v62, 0.0  ;;  %v3784_v27 = vadd.f32 %v3783_v44, %v3782_v10  ;;  %v3785_v4 = vpop.f32.mrb[86].mxu0 }
 0x23f   : > { %v3786_v61 = vpop.f32.mrb[87].mxu0 }
 0x240   : > { %v2941_v48 = vmax.f32 %v2923_v60, 0.0  ;;  %v2811_v30 = vadd.f32 %v3784_v27, %v2810_v2  ;;  %v3787_v9 = vadd.f32 %v3786_v61, %v3785_v4  ;;  %v3066_v57 = vmul.f32 %v2995_v25, %v2940_v45  ;;  %v2818_v15 = vpop.f32.mrb[88].mxu1  ;;  %v3020_v60 = vpop.permute.xlu1 %3019 }
 0x241   : > { %v3973_v49 = vpop.f32.mrb[89].mxu1  ;;  %v3015_v45 = vpop.permute.xlu0 %3014 }
 0x242   : > { %v3067_v1 = vmul.f32 %v3000_v11, %v2941_v48  ;;  %v2863_v52 = vadd.f32 %v2811_v30, %v5351_v18  ;;  %v2814_v13 = vadd.f32 %v3787_v9, %v2813_v63  ;;  %v2821_v5 = vpop.f32.mrb[90].mxu1 }
 0x243   : > { %v3974_v58 = vpop.f32.mrb[91].mxu1 }
 0x244   : > { %v3534_v47 = vpack.c.bf16 %v3067_v1, %v3066_v57  ;;  %v2924_v59 = vadd.f32 %v5389_v8, %v2863_v52  ;;  %v2864_v38 = vadd.f32 %v2814_v13, %v5354_v17  ;;  %v3788_v19 = vpop.f32.mrb[88].mxu0 }
 0x245   : > { %v3789_v3 = vpop.f32.mrb[89].mxu0  ;;  %v3025_v58 = vpop.permute.xlu0 %3024 }
 0x246   : > { %3567 = vst [vmem:[%s5400_s30 + $0x10] sm:$0xff] %v3534_v47   ;;  %v2942_v20 = vmax.f32 %v2924_v59, 0.0  ;;  %v2925_v26 = vadd.f32 %v5389_v8, %v2864_v38  ;;  %v3790_v14 = vadd.f32 %v3789_v3, %v3788_v19  ;;  %v3791_v33 = vpop.f32.mrb[90].mxu0  ;;  %v3030_v3 = vpop.permute.xlu1 %3029 }
 0x247   : > { %v3792_v28 = vpop.f32.mrb[91].mxu0 }
 0x248   : > { %v2943_v18 = vmax.f32 %v2925_v26, 0.0  ;;  %v2819_v16 = vadd.f32 %v3790_v14, %v2818_v15  ;;  %v3793_v41 = vadd.f32 %v3792_v28, %v3791_v33  ;;  %v3068_v35 = vmul.f32 %v3005_v24, %v2942_v20  ;;  %v2826_v50 = vpop.f32.mrb[92].mxu1 }
 0x249   : > { %v3977_v0 = vpop.f32.mrb[93].mxu1 }
 0x24a   : > { %v3069_v36 = vmul.f32 %v3010_v42, %v2943_v18  ;;  %v2865_v17 = vadd.f32 %v2819_v16, %v5357_v31  ;;  %v2822_v55 = vadd.f32 %v3793_v41, %v2821_v5  ;;  %v2829_v21 = vpop.f32.mrb[94].mxu1 }
 0x24b   : > { %v3978_v53 = vpop.f32.mrb[95].mxu1 }
 0x24c   : > { %v3539_v46 = vpack.c.bf16 %v3069_v36, %v3068_v35  ;;  %v2926_v22 = vadd.f32 %v5389_v8, %v2865_v17  ;;  %v2866_v34 = vadd.f32 %v2822_v55, %v5360_v12  ;;  %v3794_v43 = vpop.f32.mrb[92].mxu0 }
 0x24d   : > { %v3795_v2 = vpop.f32.mrb[93].mxu0 }
 0x24e   : > { %3568 = vst [vmem:[%s5400_s30 + $0x18] sm:$0xff] %v3539_v46   ;;  %v2944_v54 = vmax.f32 %v2926_v22, 0.0  ;;  %v2927_v56 = vadd.f32 %v5389_v8, %v2866_v34  ;;  %v3796_v62 = vadd.f32 %v3795_v2, %v3794_v43  ;;  %v3797_v10 = vpop.f32.mrb[94].mxu0  ;;  %v3040_v43 = vpop.permute.xlu1 %3039 }
 0x24f   : > { %v3798_v63 = vpop.f32.mrb[95].mxu0 }
 0x250   : > { %v2945_v31 = vmax.f32 %v2927_v56, 0.0  ;;  %v2827_v44 = vadd.f32 %v3796_v62, %v2826_v50  ;;  %v3799_v32 = vadd.f32 %v3798_v63, %v3797_v10  ;;  %v3070_v27 = vmul.f32 %v3015_v45, %v2944_v54  ;;  %v2834_v48 = vpop.f32.mrb[96].mxu1 }
 0x251   : > { %v3981_v30 = vpop.f32.mrb[97].mxu1 }
 0x252   : > { %v3071_v4 = vmul.f32 %v3020_v60, %v2945_v31  ;;  %v2867_v12 = vadd.f32 %v2827_v44, %v5363_v29  ;;  %v2830_v61 = vadd.f32 %v3799_v32, %v2829_v21  ;;  %v2837_v57 = vpop.f32.mrb[98].mxu1  ;;  %v3035_v21 = vpop.permute.xlu0 %3034 }
 0x253   : > { %v3982_v13 = vpop.f32.mrb[99].mxu1 }
 0x254   : > { %v3544_v9 = vpack.c.bf16 %v3071_v4, %v3070_v27  ;;  %v2928_v11 = vadd.f32 %v5389_v8, %v2867_v12  ;;  %v2868_v25 = vadd.f32 %v2830_v61, %v5366_v39  ;;  %v3800_v1 = vpop.f32.mrb[96].mxu0 }
 0x255   : > { %v3801_v52 = vpop.f32.mrb[97].mxu0 }
 0x256   : > { %3569 = vst [vmem:[%s5400_s30 + $0x20] sm:$0xff] %v3544_v9   ;;  %v2946_v15 = vmax.f32 %v2928_v11, 0.0  ;;  %v2929_v49 = vadd.f32 %v5389_v8, %v2868_v25  ;;  %v3802_v47 = vadd.f32 %v3801_v52, %v3800_v1  ;;  %v3803_v59 = vpop.f32.mrb[98].mxu0  ;;  %v3050_v11 = vpop.permute.xlu1 %3049 }
 0x257   : > { %v3804_v38 = vpop.f32.mrb[99].mxu0 }
 0x258   : > { %v2947_v29 = vmax.f32 %v2929_v49, 0.0  ;;  %v2835_v19 = vadd.f32 %v3802_v47, %v2834_v48  ;;  %v3805_v5 = vadd.f32 %v3804_v38, %v3803_v59  ;;  %v3072_v20 = vmul.f32 %v3025_v58, %v2946_v15  ;;  %v2842_v33 = vpop.f32.mrb[100].mxu1 }
 0x259   : > { %v3985_v28 = vpop.f32.mrb[101].mxu1 }
 0x25a   : > { %v3073_v26 = vmul.f32 %v3030_v3, %v2947_v29  ;;  %v2869_v39 = vadd.f32 %v2835_v19, %v5369_v7  ;;  %v2838_v14 = vadd.f32 %v3805_v5, %v2837_v57  ;;  %v2845_v24 = vpop.f32.mrb[102].mxu1  ;;  %v3060_v29 = vpop.permute.xlu1 %3059 }
 0x25b   : > { %v3986_v36 = vpop.f32.mrb[103].mxu1 }
 0x25c   : > { %v3549_v18 = vpack.c.bf16 %v3073_v26, %v3072_v20  ;;  %v2930_v16 = vadd.f32 %v5389_v8, %v2869_v39  ;;  %v2870_v41 = vadd.f32 %v2838_v14, %v5372_v6  ;;  %v3806_v42 = vpop.f32.mrb[100].mxu0 }
 0x25d   : > { %v3807_v35 = vpop.f32.mrb[101].mxu0 }
 0x25e   : > { %3570 = vst [vmem:[%s5400_s30 + $0x28] sm:$0xff] %v3549_v18   ;;  %v2948_v17 = vmax.f32 %v2930_v16, 0.0  ;;  %v2931_v55 = vadd.f32 %v5389_v8, %v2870_v41  ;;  %v3808_v50 = vadd.f32 %v3807_v35, %v3806_v42  ;;  %v3809_v0 = vpop.f32.mrb[102].mxu0 }
 0x25f   : > { %v3810_v46 = vpop.f32.mrb[103].mxu0 }
 0x260   : > { %v2949_v7 = vmax.f32 %v2931_v55, 0.0  ;;  %v2843_v22 = vadd.f32 %v3808_v50, %v2842_v33  ;;  %v3811_v34 = vadd.f32 %v3810_v46, %v3809_v0  ;;  %v3074_v2 = vmul.f32 %v3035_v21, %v2948_v17  ;;  %v2850_v56 = vpop.f32.mrb[104].mxu1 }
 0x261   : > { %v3989_v62 = vpop.f32.mrb[105].mxu1 }
 0x262   : > { %v3075_v53 = vmul.f32 %v3040_v43, %v2949_v7  ;;  %v2871_v6 = vadd.f32 %v2843_v22, %v5375_v40  ;;  %v2846_v54 = vadd.f32 %v3811_v34, %v2845_v24  ;;  %v2853_v32 = vpop.f32.mrb[106].mxu1 }
 0x263   : > { %v3990_v45 = vpop.f32.mrb[107].mxu1 }
 0x264   : > { %v3554_v10 = vpack.c.bf16 %v3075_v53, %v3074_v2  ;;  %v2932_v63 = vadd.f32 %v5389_v8, %v2871_v6  ;;  %v2872_v31 = vadd.f32 %v2846_v54, %v5378_v51  ;;  %v3812_v44 = vpop.f32.mrb[104].mxu0  ;;  %v3045_v51 = vpop.permute.xlu0 %3044 }
 0x265   : > { %v3813_v60 = vpop.f32.mrb[105].mxu0 }
 0x266   : > { %3571 = vst [vmem:[%s5400_s30 + $0x30] sm:$0xff] %v3554_v10   ;;  %v2950_v27 = vmax.f32 %v2932_v63, 0.0  ;;  %v2933_v4 = vadd.f32 %v5389_v8, %v2872_v31  ;;  %v3814_v12 = vadd.f32 %v3813_v60, %v3812_v44  ;;  %v3815_v40 = vpop.f32.mrb[106].mxu0 }
 0x267   : > { %v3816_v61 = vpop.f32.mrb[107].mxu0 }
 0x268   : > { %v2951_v48 = vmax.f32 %v2933_v4, 0.0  ;;  %v2851_v30 = vadd.f32 %v3814_v12, %v2850_v56  ;;  %v3817_v9 = vadd.f32 %v3816_v61, %v3815_v40  ;;  %v3076_v25 = vmul.f32 %v3045_v51, %v2950_v27  ;;  %v3055_v19 = vpop.permute.xlu0 %3054 }
 0x26a   : > { %v3077_v1 = vmul.f32 %v3050_v11, %v2951_v48  ;;  %v2873_v57 = vadd.f32 %v2851_v30, %v5381_v23  ;;  %v2854_v52 = vadd.f32 %v3817_v9, %v2853_v32 }
 0x26c   : > { %v3559_v13 = vpack.c.bf16 %v3077_v1, %v3076_v25  ;;  %v2934_v15 = vadd.f32 %v5389_v8, %v2873_v57  ;;  %v2874_v49 = vadd.f32 %v2854_v52, %v5384_v37 }
 0x26e   : > { %3572 = vst [vmem:[%s5400_s30 + $0x38] sm:$0xff] %v3559_v13   ;;  %v2952_v47 = vmax.f32 %v2934_v15, 0.0  ;;  %v2935_v59 = vadd.f32 %v5389_v8, %v2874_v49 }
 0x270   : > { %v2953_v38 = vmax.f32 %v2935_v59, 0.0  ;;  %v3078_v23 = vmul.f32 %v3055_v19, %v2952_v47 }
 0x272   : > { %v3079_v5 = vmul.f32 %v3060_v29, %v2953_v38 }
 0x274   : > { %v3564_v37 = vpack.c.bf16 %v3079_v5, %v3078_v23 }
 0x276   : > { %3573 = vst [vmem:[%s5400_s30 + $0x40] sm:$0xff] %v3564_v37  }
 0x277   : > { %4378 = shalt.err (!%p4375_p6)
}
 0x278   : > { %s4379_s2 = scalar_lea.hbm %s5445_s4, 1152  ;;  %s4383_s0 = scalar_lea.hbm %s5574_s15, 4608 }
 0x279   : > { %p4380_p10 = scmp.ne.s32.totalorder %s5445_s4, %s4379_s2  ;;  %p4384_p1 = scmp.lt.u32.totalorder %s5445_s4, %s5574_s15 }
 0x27a   : > { %p4385_p3 = scmp.lt.u32.totalorder %s4383_s0, %s4379_s2  ;;  %p4387_p9 = scmp.lt.u32.totalorder %s4379_s2, %s5445_s4 }
 0x27b   : > { %p4381_p4 = pnand %p4380_p10, %p5575_p7 }
 0x27c   : > { %p4386_p5 = por %p4385_p3, %p4384_p1 }
 0x27d   : > { %p4382_p0 = pneg %p4381_p4 }
 0x27e   : > { %p4388_p12 = por %p4387_p9, %p4386_p5 }
 0x280   : > { %p4389_p13 = pnand %p4388_p12, %p4382_p0 }
 0x282   : > { %4392 = shalt.err (!%p4389_p13)
}
 0x283   : > { %s4506_s11 = smov 64   ;;  %s4507_s16 = smov 4  }
 0x284   : > { %4005 = dma.vmem_to_hbm [thread:$0]  (%p5575_p7), %s5447_s18, 1152, %s5445_s4, %s3171_s8, %s4506_s11, %s4506_s11, %s4507_s16  }
 0x285 PF: > { %s5576_s9 = sld [smem:[#allocation16_spill]]  ;;  %s5577_s24 = sld [smem:[#allocation19_spill]] }
 0x286   : > { %p4025_p8 = scmp.ge.s32.totalorder %s4495_s28, 2 }
 0x28b   : > { %s3201_s29 = sand.u32 1, %s5576_s9   ;;  %p5578_p2 = scmp.ne.s32.totalorder %s5577_s24, 0 }
 0x28c   : > { %s3202_s6 = scalar_lea.sflag [#allocation7], %s3201_s29 }
 0x28d   : > { %p4019_p11 = pnand %p4025_p8, %p5578_p2 }
 0x28f   : > { %4450 = dma.done.wait (!%p4019_p11), %s3202_s6, 1152  }
 0x290   : > { %4452 = vsyncadd (!%p4019_p11), %s3202_s6, 4294966144  ;;  %s24_s28 = sadd.s32 1, %s4495_s28   ;;  %s5579_s13 = sld [smem:[#allocation20_spill]] }
 0x291   : > { %p21_p6 = scmp.ge.s32.totalorder %s24_s28, 6   ;;  %s5580_s12 = sld [smem:[#allocation21_spill]] }
 0x292   : > { %s5581_s18 = smov %s4459_s19  ;;  %s5582_s19 = smov %s4463_s20 }
 0x293   : > { %s5583_s20 = smov %s4748_s21  ;;  %s5584_s21 = smov %s4471_s22 }
 0x294   : > { %s5585_s22 = smov %s4475_s23  ;;  %s5586_s23 = smov %s4678_s5 }
 0x295   : > { %s5587_s24 = smov %s4487_s26  ;;  %s5588_s25 = smov %s4491_s27 }
 0x296   : > { %s5589_s26 = smov %s5579_s13  ;;  %23 = sbr.rel (!%p21_p6) target bundleno = 17 (0x11), region = 104 }
 0x297   : > { %s5590_s27 = smov %s5580_s12 }
 0x29d   :  { %3207 = vsyncpa [#allocation6], 1 }
 0x29e   :  { %3209 = vsyncpa [#allocation6 + $0x1], 1 }
 0x29f   :  { %3210 = vsyncpa [#allocation9], 1 }
 0x2a0   :  { %3212 = vsyncpa [#allocation9 + $0x1], 1 }
 0x2a1   :  { %3213 = vsyncpa [#allocation7], 1 }
 0x2a2   :  { %3215 = vsyncpa [#allocation7 + $0x1], 1 }

</bundles_post_ra>
